<compile_context>
chip_gen: v7x
topology: tpu7x:2x2x1
jax: 0.10.0
libtpu: 0.0.40
codegen_flags: <defaults>
</compile_context>

<pallas_src>
import functools

import numpy as np
import jax
import jax.numpy as jnp
from jax.experimental import pallas as pl
from jax.experimental.pallas import tpu as pltpu


# ----------------------------------------------------------------------------
# Pallas kernel: one HetSANNConv layer, gridded over edge tiles
# ----------------------------------------------------------------------------
def _hetsann_conv_kernel(src_ref, dst_ref, et_ref, ew_ref, feat_ref,
                         wcat_ref, bcat_ref, wres_ref, bres_ref,
                         out_ref, acc_ref, *,
                         num_etypes, num_heads, out_dim, negative_slope,
                         use_residual, use_act, out_pad):
    f32 = jnp.float32
    T, H, D = num_etypes, num_heads, out_dim
    HD = H * D
    tE = src_ref.shape[0]
    N = feat_ref.shape[0]

    @pl.when(pl.program_id(0) == 0)
    def _init():
        acc_ref[...] = jnp.zeros_like(acc_ref)

    feat = feat_ref[...]                                          # (N, Fin)

    # --- copy_u gather: one-hot mask built in-kernel (no (E,N) HBM array) ---
    src_ids = src_ref[...]                                        # (tE, 1) int32
    lane_n = jax.lax.broadcasted_iota(jnp.int32, (tE, N), 1)
    src_oh = (lane_n == src_ids).astype(f32)                      # (tE, N)
    h_src = jnp.dot(src_oh, feat, preferred_element_type=f32)     # (tE, Fin)

    # --- TypedLinear W fused into one wide matmul + VPU etype mask ---------
    h_all = jnp.dot(h_src, wcat_ref[...],
                    preferred_element_type=f32)                   # (tE, T*HD)
    et_ids = et_ref[...]                                          # (tE, 1) int32
    lane_t = jax.lax.broadcasted_iota(jnp.int32, (tE, T), 1)
    et_oh = (lane_t == et_ids).astype(f32)                        # (tE, T)

    h = et_oh[:, 0:1] * h_all[:, 0:HD]
    for t in range(1, T):
        h = h + et_oh[:, t:t + 1] * h_all[:, t * HD:(t + 1) * HD]

    # (dropout == identity in eval mode)

    # --- attention logits: (a_l + a_r) and per-head sum folded into Bcat ---
    s_all = jnp.dot(h, bcat_ref[...], preferred_element_type=f32)  # (tE, T*H)
    s = et_oh[:, 0:1] * s_all[:, 0:H]
    for t in range(1, T):
        s = s + et_oh[:, t:t + 1] * s_all[:, t * H:(t + 1) * H]

    s = jnp.where(s > 0, s, negative_slope * s)                   # LeakyReLU
    att = pl.reciprocal(1.0 + jnp.exp(-s))                        # sigmoid (EUP)
    att = att * ew_ref[...]                                       # (tE,H)*(tE,1)

    # --- alpha[e, h*D+d] = h[e, h*D+d] * att[e, h]  (VPU broadcast) --------
    parts = [h[:, hh * D:(hh + 1) * D] * att[:, hh:hh + 1] for hh in range(H)]
    alpha = parts[0] if H == 1 else jnp.concatenate(parts, axis=1)  # (tE, HD)

    # --- update_all(copy_e, sum): transposed one-hot scatter, MXU ----------
    dst_ids = dst_ref[...]                                        # (1, tE) int32
    sub_n = jax.lax.broadcasted_iota(jnp.int32, (N, tE), 0)
    dst_ohT = (sub_n == dst_ids).astype(f32)                      # (N, tE)
    acc_ref[...] = acc_ref[...] + jnp.dot(dst_ohT, alpha,
                                          preferred_element_type=f32)

    # --- epilogue: residual + ELU + lane-dense (padded) store --------------
    @pl.when(pl.program_id(0) == pl.num_programs(0) - 1)
    def _finalize():
        out = acc_ref[...]                                        # (N, HD) [h,d]
        if use_residual:
            out = out + jnp.dot(feat, wres_ref[...],
                                preferred_element_type=f32) + bres_ref[...]
        if use_act:  # ELU
            out = jnp.where(out > 0, out,
                            jnp.exp(jnp.minimum(out, 0.0)) - 1.0)
        if out_pad > HD:
            out = jnp.concatenate(
                [out, jnp.zeros((N, out_pad - HD), f32)], axis=1)
        out_ref[...] = out


def hetsann_conv_pallas(feat, src_col, dst_row, et_col, ew_col, params, *,
                        num_heads, out_dim, negative_slope,
                        use_residual, use_act, edge_tile=128):
    N, Fin = feat.shape
    H, D = num_heads, out_dim
    HD = H * D
    T = int(params['W'].shape[0])
    HDp = ((HD + 127) // 128) * 128          # lane-dense padded output width
    E_pad = src_col.shape[0]
    n_tiles = E_pad // edge_tile

    # fused typed-linear weights (host-side, once per layer)
    Wcat = jnp.transpose(params['W'], (1, 0, 2)).reshape(Fin, T * HD)
    B = (params['Al'] + params['Ar']).reshape(T, HD, H, D).sum(-1)   # (T,HD,H)
    Bcat = jnp.transpose(B, (1, 0, 2)).reshape(HD, T * H)

    # residual weights permuted into [h,d] column order (kernel-internal layout)
    perm_res = np.array([(k % D) * H + (k // D) for k in range(HD)], np.int32)
    Wres_hd = params['Wres'][:, perm_res]
    bres_hd = params['bres'][perm_res].reshape(1, HD)

    kernel = functools.partial(
        _hetsann_conv_kernel,
        num_etypes=T, num_heads=H, out_dim=D,
        negative_slope=negative_slope,
        use_residual=use_residual, use_act=use_act, out_pad=HDp)

    grid_spec = pltpu.PrefetchScalarGridSpec(
        num_scalar_prefetch=0,
        grid=(n_tiles,),
        in_specs=[
            pl.BlockSpec((edge_tile, 1), lambda e: (e, 0)),   # src ids
            pl.BlockSpec((1, edge_tile), lambda e: (0, e)),   # dst ids (row)
            pl.BlockSpec((edge_tile, 1), lambda e: (e, 0)),   # etype ids
            pl.BlockSpec((edge_tile, 1), lambda e: (e, 0)),   # edge weight
            pl.BlockSpec((N, Fin), lambda e: (0, 0)),         # feat (resident)
            pl.BlockSpec((Fin, T * HD), lambda e: (0, 0)),    # fused W
            pl.BlockSpec((HD, T * H), lambda e: (0, 0)),      # fused (Al+Ar)@R
            pl.BlockSpec((Fin, HD), lambda e: (0, 0)),        # residual W
            pl.BlockSpec((1, HD), lambda e: (0, 0)),          # residual b
        ],
        out_specs=pl.BlockSpec((N, HDp), lambda e: (0, 0)),
        scratch_shapes=[pltpu.VMEM((N, HD), jnp.float32)],
    )

    out_padded = pl.pallas_call(
        kernel,
        out_shape=jax.ShapeDtypeStruct((N, HDp), jnp.float32),
        grid_spec=grid_spec,
        compiler_params=pltpu.CompilerParams(
            dimension_semantics=("arbitrary",),
            vmem_limit_bytes=32 * 1024 * 1024),
    )(src_col, dst_row, et_col, ew_col, feat, Wcat, Bcat, Wres_hd, bres_hd)

    out_hd = out_padded[:, :HD]
    # static column permutation [h,d] -> [d,h] (matches torch permute+reshape)
    perm_dh = np.array([(j % H) * D + (j // H) for j in range(HD)], np.int32)
    return out_hd[:, perm_dh]


# ----------------------------------------------------------------------------
# Full HetSANN forward (stack of HetSANNConv layers)
# ----------------------------------------------------------------------------
def hetsann_forward_pallas(feat, src, dst, etypes, edge_weight, params,
                           layer_cfg, negative_slope, edge_tile=128):
    E = src.shape[0]
    E_pad = ((E + edge_tile - 1) // edge_tile) * edge_tile
    pad = E_pad - E
    src_col = jnp.pad(src.astype(jnp.int32), (0, pad)).reshape(E_pad, 1)
    dst_row = jnp.pad(dst.astype(jnp.int32), (0, pad)).reshape(1, E_pad)
    et_col = jnp.pad(etypes.astype(jnp.int32), (0, pad)).reshape(E_pad, 1)
    ew = (jnp.ones((E,), jnp.float32) if edge_weight is None
          else edge_weight.astype(jnp.float32))
    # padded edges get weight 0 -> attention 0 -> zero scatter contribution
    ew_col = jnp.pad(ew, (0, pad)).reshape(E_pad, 1)

    h = feat.astype(jnp.float32)
    for p, (_, H, D, res, act) in zip(params, layer_cfg):
        h = hetsann_conv_pallas(h, src_col, dst_row, et_col, ew_col, p,
                                num_heads=H, out_dim=D,
                                negative_slope=negative_slope,
                                use_residual=res, use_act=act,
                                edge_tile=edge_tile)
    return h


# ----------------------------------------------------------------------------
# Pure-JAX reference (mirrors the PyTorch/DGL math) for correctness check
# ----------------------------------------------------------------------------
def _conv_ref(feat, src, dst, etypes, ew, p, H, D, neg_slope, res, act):
    E = src.shape[0]
    h_src = feat[src]
    h = jnp.einsum('ef,efo->eo', h_src, p['W'][etypes])
    hl = jnp.einsum('eo,eop->ep', h, p['Al'][etypes])
    hr = jnp.einsum('eo,eop->ep', h, p['Ar'][etypes])
    sl = hl.reshape(E, H, D).sum(-1)
    sr = hr.reshape(E, H, D).sum(-1)
    s = sl + sr
    s = jnp.where(s > 0, s, neg_slope * s)
    att = jax.nn.sigmoid(s)
    if ew is not None:
        att = att * ew[:, None]
    h3 = jnp.transpose(h.reshape(E, H, D), (0, 2, 1))           # (E, D, H)
    alpha = h3 * att[:, None, :]
    N = feat.shape[0]
    emb = jnp.zeros((N, D, H), jnp.float32).at[dst].add(alpha)
    out = emb.reshape(N, D * H)
    if res:
        out = out + feat @ p['Wres'] + p['bres']
    if act:
        out = jnp.where(out > 0, out, jnp.exp(jnp.minimum(out, 0.0)) - 1.0)
    return out


def hetsann_forward_ref(feat, src, dst, etypes, edge_weight, params,
                        layer_cfg, negative_slope):
    h = feat
    for p, (_, H, D, res, act) in zip(params, layer_cfg):
        h = _conv_ref(h, src, dst, etypes, edge_weight, p, H, D,
                      negative_slope, res, act)
    return h


# ----------------------------------------------------------------------------
# Deterministic parameter init (shapes from HetSANNConv.__init__)
# ----------------------------------------------------------------------------
def init_params(key, num_etypes, layer_cfg):
    params = []
    for (fin, H, D, res, _act) in layer_cfg:
        HD = H * D
        key, k1, k2, k3, k4, k5 = jax.random.split(key, 6)
        params.append(dict(
            W=0.1 * jax.random.normal(k1, (num_etypes, fin, HD), jnp.float32),
            Al=0.1 * jax.random.normal(k2, (num_etypes, HD, HD), jnp.float32),
            Ar=0.1 * jax.random.normal(k3, (num_etypes, HD, HD), jnp.float32),
            Wres=(0.1 * jax.random.normal(k4, (fin, HD), jnp.float32)
                  if res else jnp.zeros((fin, HD), jnp.float32)),
            bres=(0.1 * jax.random.normal(k5, (HD,), jnp.float32)
                  if res else jnp.zeros((HD,), jnp.float32)),
        ))
    return params


if __name__ == "__main__":
    key = jax.random.PRNGKey(0)

    # model config (small, consistent with HetSANN.__init__)
    input_dim, output_dim, num_heads, num_layers = 16, 8, 4, 3
    meta_rels = [("author", "writes", "paper"),
                 ("paper", "cites", "paper"),
                 ("paper", "written_by", "author")]
    num_etypes = len(meta_rels)
    negative_slope = 0.2
    hidden = input_dim // num_heads  # 4

    # synthetic homogeneous graph (dgl.to_homogeneous output stand-in)
    # E chosen > edge_tile so the tiled accumulator path is actually exercised
    N, E = 16, 300                   # 6 "author" + 10 "paper" nodes
    key, kf, ks, kd, ke, kw = jax.random.split(key, 6)
    feat = jax.random.normal(kf, (N, input_dim), jnp.float32)
    src = jax.random.randint(ks, (E,), 0, N)
    dst = jax.random.randint(kd, (E,), 0, N)
    etypes = jax.random.randint(ke, (E,), 0, num_etypes)
    edge_weight = jax.random.uniform(kw, (E,), jnp.float32)
    ntype_idx = np.array([0] * 6 + [1] * 10)     # dgl.NTYPE per node

    # layer configs: (in_dim, num_heads, out_dim, residual, activation==elu)
    layer_cfg = [(input_dim, num_heads, hidden, False, True)]
    for _ in range(1, num_layers - 1):
        layer_cfg.append((hidden * num_heads, num_heads, hidden, True, True))
    layer_cfg.append((hidden * num_heads, 1, output_dim, True, False))

    key, kp = jax.random.split(key)
    params = init_params(kp, num_etypes, layer_cfg)

    out = hetsann_forward_pallas(feat, src, dst, etypes, edge_weight,
                                 params, layer_cfg, negative_slope,
                                 edge_tile=128)
    out = jax.block_until_ready(out)

    ref = hetsann_forward_ref(feat, src, dst, etypes, edge_weight,
                              params, layer_cfg, negative_slope)

    np_out = np.asarray(out)
    np_ref = np.asarray(ref)
    err = float(np.max(np.abs(np_out - np_ref)))
    assert err < 1e-3, f"mismatch vs reference: max abs err = {err}"

    # final per-node-type split (HetSANN returns new_feat_dict[out_key])
    out_key_index = 1                            # "paper"
    feat_paper = np_out[ntype_idx == out_key_index]
    assert feat_paper.shape == (int((ntype_idx == out_key_index).sum()),
                                output_dim)

    print("KERNEL_OK")
</pallas_src>

<mosaic_0001>
module attributes {stable_mosaic.version = 11 : i64} {
  func.func @_hetsann_conv_kernel(%arg0: i32, %arg1: memref<128x1xi32, #tpu.memory_space<vmem>>, %arg2: memref<1x128xi32, #tpu.memory_space<vmem>>, %arg3: memref<128x1xi32, #tpu.memory_space<vmem>>, %arg4: memref<128x1xf32, #tpu.memory_space<vmem>>, %arg5: memref<16x16xf32, #tpu.memory_space<vmem>>, %arg6: memref<16x48xf32, #tpu.memory_space<vmem>>, %arg7: memref<16x12xf32, #tpu.memory_space<vmem>>, %arg8: memref<16x16xf32, #tpu.memory_space<vmem>>, %arg9: memref<1x16xf32, #tpu.memory_space<vmem>>, %arg10: memref<16x128xf32, #tpu.memory_space<vmem>>, %arg11: memref<16x16xf32, #tpu.memory_space<vmem>>) attributes {dimension_semantics = [#tpu.dimension_semantics<arbitrary>], iteration_bounds = array<i64: 3>, scalar_prefetch = 0 : i64, scratch_operands = 1 : i64, tpu.core_type = #tpu.core_type<tc>, window_params = [{transform_indices = @transform_0, window_bounds = array<i64: 128, 1>}, {transform_indices = @transform_1, window_bounds = array<i64: 1, 128>}, {transform_indices = @transform_2, window_bounds = array<i64: 128, 1>}, {transform_indices = @transform_3, window_bounds = array<i64: 128, 1>}, {pipeline_mode = #tpu.pipeline_mode<synchronous>, transform_indices = @transform_4, window_bounds = array<i64: 16, 16>}, {pipeline_mode = #tpu.pipeline_mode<synchronous>, transform_indices = @transform_5, window_bounds = array<i64: 16, 48>}, {pipeline_mode = #tpu.pipeline_mode<synchronous>, transform_indices = @transform_6, window_bounds = array<i64: 16, 12>}, {pipeline_mode = #tpu.pipeline_mode<synchronous>, transform_indices = @transform_7, window_bounds = array<i64: 16, 16>}, {pipeline_mode = #tpu.pipeline_mode<synchronous>, transform_indices = @transform_8, window_bounds = array<i64: 1, 16>}, {pipeline_mode = #tpu.pipeline_mode<synchronous>, transform_indices = @transform_9, window_bounds = array<i64: 16, 128>}]} {
    %c0_i32 = arith.constant 0 : i32
    %0 = arith.cmpi eq, %arg0, %c0_i32 : i32
    %1 = arith.extui %0 : i1 to i32
    %c0_i32_0 = arith.constant 0 : i32
    %2 = arith.cmpi ne, %1, %c0_i32_0 : i32
    scf.if %2 {
      %cst_26 = arith.constant 0.000000e+00 : f32
      %93 = vector.broadcast %cst_26 : f32 to vector<16x16xf32>
      %c0_27 = arith.constant 0 : index
      %c0_28 = arith.constant 0 : index
      %94 = vector.load %arg11[%c0_27, %c0_28] : memref<16x16xf32, #tpu.memory_space<vmem>>, vector<16x16xf32>
      tpu.vector_store %arg11[%c0_27, %c0_28], %93 {strides = array<i32>} : memref<16x16xf32, #tpu.memory_space<vmem>>, vector<16x16xf32>,
    } else {
    }
    %c0 = arith.constant 0 : index
    %c0_1 = arith.constant 0 : index
    %3 = vector.load %arg5[%c0, %c0_1] : memref<16x16xf32, #tpu.memory_space<vmem>>, vector<16x16xf32>
    %c0_2 = arith.constant 0 : index
    %c0_3 = arith.constant 0 : index
    %4 = vector.load %arg1[%c0_2, %c0_3] : memref<128x1xi32, #tpu.memory_space<vmem>>, vector<128x1xi32>
    %5 = tpu.iota {dimensions = array<i32: 1>} : vector<128x16xi32>
    %6 = vector.broadcast %4 : vector<128x1xi32> to vector<128x16xi32>
    %7 = arith.cmpi eq, %5, %6 : vector<128x16xi32>
    %8 = arith.extui %7 : vector<128x16xi1> to vector<128x16xi32>
    %9 = arith.sitofp %8 : vector<128x16xi32> to vector<128x16xf32>
    %cst = arith.constant dense<0.000000e+00> : vector<128x16xf32>
    %10 = tpu.matmul %9, %3, %cst {dimension_numbers = #tpu.dot_dimension_numbers<[1], [0], [0], [1], [0, 0, 1, 1], [], []>} : vector<128x16xf32>, vector<16x16xf32>, vector<128x16xf32> -> vector<128x16xf32>
    %c0_4 = arith.constant 0 : index
    %c0_5 = arith.constant 0 : index
    %11 = vector.load %arg6[%c0_4, %c0_5] : memref<16x48xf32, #tpu.memory_space<vmem>>, vector<16x48xf32>
    %cst_6 = arith.constant dense<0.000000e+00> : vector<128x48xf32>
    %12 = tpu.matmul %10, %11, %cst_6 {dimension_numbers = #tpu.dot_dimension_numbers<[1], [0], [0], [1], [0, 0, 1, 1], [], []>} : vector<128x16xf32>, vector<16x48xf32>, vector<128x48xf32> -> vector<128x48xf32>
    %c0_7 = arith.constant 0 : index
    %c0_8 = arith.constant 0 : index
    %13 = vector.load %arg3[%c0_7, %c0_8] : memref<128x1xi32, #tpu.memory_space<vmem>>, vector<128x1xi32>
    %14 = tpu.iota {dimensions = array<i32: 1>} : vector<128x3xi32>
    %15 = vector.broadcast %13 : vector<128x1xi32> to vector<128x3xi32>
    %16 = arith.cmpi eq, %14, %15 : vector<128x3xi32>
    %17 = arith.extui %16 : vector<128x3xi1> to vector<128x3xi32>
    %18 = arith.sitofp %17 : vector<128x3xi32> to vector<128x3xf32>
    %19 = vector.extract_strided_slice %18 {offsets = [0, 0], sizes = [128, 1], strides = [1, 1]} : vector<128x3xf32> to vector<128x1xf32>
    %20 = vector.extract_strided_slice %12 {offsets = [0, 0], sizes = [128, 16], strides = [1, 1]} : vector<128x48xf32> to vector<128x16xf32>
    %21 = vector.broadcast %19 : vector<128x1xf32> to vector<128x16xf32>
    %22 = arith.mulf %21, %20 : vector<128x16xf32>
    %23 = vector.extract_strided_slice %18 {offsets = [0, 1], sizes = [128, 1], strides = [1, 1]} : vector<128x3xf32> to vector<128x1xf32>
    %24 = vector.extract_strided_slice %12 {offsets = [0, 16], sizes = [128, 16], strides = [1, 1]} : vector<128x48xf32> to vector<128x16xf32>
    %25 = vector.broadcast %23 : vector<128x1xf32> to vector<128x16xf32>
    %26 = arith.mulf %25, %24 : vector<128x16xf32>
    %27 = arith.addf %22, %26 : vector<128x16xf32>
    %28 = vector.extract_strided_slice %18 {offsets = [0, 2], sizes = [128, 1], strides = [1, 1]} : vector<128x3xf32> to vector<128x1xf32>
    %29 = vector.extract_strided_slice %12 {offsets = [0, 32], sizes = [128, 16], strides = [1, 1]} : vector<128x48xf32> to vector<128x16xf32>
    %30 = vector.broadcast %28 : vector<128x1xf32> to vector<128x16xf32>
    %31 = arith.mulf %30, %29 : vector<128x16xf32>
    %32 = arith.addf %27, %31 : vector<128x16xf32>
    %c0_9 = arith.constant 0 : index
    %c0_10 = arith.constant 0 : index
    %33 = vector.load %arg7[%c0_9, %c0_10] : memref<16x12xf32, #tpu.memory_space<vmem>>, vector<16x12xf32>
    %cst_11 = arith.constant dense<0.000000e+00> : vector<128x12xf32>
    %34 = tpu.matmul %32, %33, %cst_11 {dimension_numbers = #tpu.dot_dimension_numbers<[1], [0], [0], [1], [0, 0, 1, 1], [], []>} : vector<128x16xf32>, vector<16x12xf32>, vector<128x12xf32> -> vector<128x12xf32>
    %35 = vector.extract_strided_slice %18 {offsets = [0, 0], sizes = [128, 1], strides = [1, 1]} : vector<128x3xf32> to vector<128x1xf32>
    %36 = vector.extract_strided_slice %34 {offsets = [0, 0], sizes = [128, 4], strides = [1, 1]} : vector<128x12xf32> to vector<128x4xf32>
    %37 = vector.broadcast %35 : vector<128x1xf32> to vector<128x4xf32>
    %38 = arith.mulf %37, %36 : vector<128x4xf32>
    %39 = vector.extract_strided_slice %18 {offsets = [0, 1], sizes = [128, 1], strides = [1, 1]} : vector<128x3xf32> to vector<128x1xf32>
    %40 = vector.extract_strided_slice %34 {offsets = [0, 4], sizes = [128, 4], strides = [1, 1]} : vector<128x12xf32> to vector<128x4xf32>
    %41 = vector.broadcast %39 : vector<128x1xf32> to vector<128x4xf32>
    %42 = arith.mulf %41, %40 : vector<128x4xf32>
    %43 = arith.addf %38, %42 : vector<128x4xf32>
    %44 = vector.extract_strided_slice %18 {offsets = [0, 2], sizes = [128, 1], strides = [1, 1]} : vector<128x3xf32> to vector<128x1xf32>
    %45 = vector.extract_strided_slice %34 {offsets = [0, 8], sizes = [128, 4], strides = [1, 1]} : vector<128x12xf32> to vector<128x4xf32>
    %46 = vector.broadcast %44 : vector<128x1xf32> to vector<128x4xf32>
    %47 = arith.mulf %46, %45 : vector<128x4xf32>
    %48 = arith.addf %43, %47 : vector<128x4xf32>
    %cst_12 = arith.constant 0.000000e+00 : f32
    %49 = vector.broadcast %cst_12 : f32 to vector<128x4xf32>
    %50 = arith.cmpf ogt, %48, %49 : vector<128x4xf32>
    %cst_13 = arith.constant 2.000000e-01 : f32
    %51 = vector.broadcast %cst_13 : f32 to vector<128x4xf32>
    %52 = arith.mulf %51, %48 : vector<128x4xf32>
    %53 = arith.select %50, %48, %52 : vector<128x4xi1>, vector<128x4xf32>
    %cst_14 = arith.constant 0.000000e+00 : f32
    %54 = vector.broadcast %cst_14 : f32 to vector<128x4xf32>
    %55 = arith.subf %54, %53 : vector<128x4xf32>
    %56 = math.exp %55 : vector<128x4xf32>
    %cst_15 = arith.constant 1.000000e+00 : f32
    %57 = vector.broadcast %cst_15 : f32 to vector<128x4xf32>
    %58 = arith.addf %57, %56 : vector<128x4xf32>
    %59 = tpu.reciprocal %58 : vector<128x4xf32> -> vector<128x4xf32>
    %c0_16 = arith.constant 0 : index
    %c0_17 = arith.constant 0 : index
    %60 = vector.load %arg4[%c0_16, %c0_17] : memref<128x1xf32, #tpu.memory_space<vmem>>, vector<128x1xf32>
    %61 = vector.broadcast %60 : vector<128x1xf32> to vector<128x4xf32>
    %62 = arith.mulf %59, %61 : vector<128x4xf32>
    %63 = vector.extract_strided_slice %32 {offsets = [0, 0], sizes = [128, 4], strides = [1, 1]} : vector<128x16xf32> to vector<128x4xf32>
    %64 = vector.extract_strided_slice %62 {offsets = [0, 0], sizes = [128, 1], strides = [1, 1]} : vector<128x4xf32> to vector<128x1xf32>
    %65 = vector.broadcast %64 : vector<128x1xf32> to vector<128x4xf32>
    %66 = arith.mulf %63, %65 : vector<128x4xf32>
    %67 = vector.extract_strided_slice %32 {offsets = [0, 4], sizes = [128, 4], strides = [1, 1]} : vector<128x16xf32> to vector<128x4xf32>
    %68 = vector.extract_strided_slice %62 {offsets = [0, 1], sizes = [128, 1], strides = [1, 1]} : vector<128x4xf32> to vector<128x1xf32>
    %69 = vector.broadcast %68 : vector<128x1xf32> to vector<128x4xf32>
    %70 = arith.mulf %67, %69 : vector<128x4xf32>
    %71 = vector.extract_strided_slice %32 {offsets = [0, 8], sizes = [128, 4], strides = [1, 1]} : vector<128x16xf32> to vector<128x4xf32>
    %72 = vector.extract_strided_slice %62 {offsets = [0, 2], sizes = [128, 1], strides = [1, 1]} : vector<128x4xf32> to vector<128x1xf32>
    %73 = vector.broadcast %72 : vector<128x1xf32> to vector<128x4xf32>
    %74 = arith.mulf %71, %73 : vector<128x4xf32>
    %75 = vector.extract_strided_slice %32 {offsets = [0, 12], sizes = [128, 4], strides = [1, 1]} : vector<128x16xf32> to vector<128x4xf32>
    %76 = vector.extract_strided_slice %62 {offsets = [0, 3], sizes = [128, 1], strides = [1, 1]} : vector<128x4xf32> to vector<128x1xf32>
    %77 = vector.broadcast %76 : vector<128x1xf32> to vector<128x4xf32>
    %78 = arith.mulf %75, %77 : vector<128x4xf32>
    %79 = tpu.concatenate %66, %70, %74, %78 in 1 : vector<128x4xf32>, vector<128x4xf32>, vector<128x4xf32>, vector<128x4xf32> -> vector<128x16xf32>
    %c0_18 = arith.constant 0 : index
    %c0_19 = arith.constant 0 : index
    %80 = vector.load %arg2[%c0_18, %c0_19] : memref<1x128xi32, #tpu.memory_space<vmem>>, vector<1x128xi32>
    %81 = tpu.iota {dimensions = array<i32: 0>} : vector<16x128xi32>
    %82 = vector.broadcast %80 : vector<1x128xi32> to vector<16x128xi32>
    %83 = arith.cmpi eq, %81, %82 : vector<16x128xi32>
    %84 = arith.extui %83 : vector<16x128xi1> to vector<16x128xi32>
    %85 = arith.sitofp %84 : vector<16x128xi32> to vector<16x128xf32>
    %c0_20 = arith.constant 0 : index
    %c0_21 = arith.constant 0 : index
    %86 = vector.load %arg11[%c0_20, %c0_21] : memref<16x16xf32, #tpu.memory_space<vmem>>, vector<16x16xf32>
    %cst_22 = arith.constant dense<0.000000e+00> : vector<16x16xf32>
    %87 = tpu.matmul %85, %79, %cst_22 {dimension_numbers = #tpu.dot_dimension_numbers<[1], [0], [0], [1], [0, 0, 1, 1], [], []>} : vector<16x128xf32>, vector<128x16xf32>, vector<16x16xf32> -> vector<16x16xf32>
    %88 = arith.addf %86, %87 : vector<16x16xf32>
    %c0_23 = arith.constant 0 : index
    %c0_24 = arith.constant 0 : index
    %89 = vector.load %arg11[%c0_23, %c0_24] : memref<16x16xf32, #tpu.memory_space<vmem>>, vector<16x16xf32>
    tpu.vector_store %arg11[%c0_23, %c0_24], %88 {strides = array<i32>} : memref<16x16xf32, #tpu.memory_space<vmem>>, vector<16x16xf32>,
    %c2_i32 = arith.constant 2 : i32
    %90 = arith.cmpi eq, %arg0, %c2_i32 : i32
    %91 = arith.extui %90 : i1 to i32
    %c0_i32_25 = arith.constant 0 : i32
    %92 = arith.cmpi ne, %91, %c0_i32_25 : i32
    scf.if %92 {
      %c0_26 = arith.constant 0 : index
      %c0_27 = arith.constant 0 : index
      %93 = vector.load %arg11[%c0_26, %c0_27] : memref<16x16xf32, #tpu.memory_space<vmem>>, vector<16x16xf32>
      %cst_28 = arith.constant 0.000000e+00 : f32
      %94 = vector.broadcast %cst_28 : f32 to vector<16x16xf32>
      %95 = arith.cmpf ogt, %93, %94 : vector<16x16xf32>
      %cst_29 = arith.constant 0.000000e+00 : f32
      %96 = vector.broadcast %cst_29 : f32 to vector<16x16xf32>
      %97 = arith.minimumf %93, %96 : vector<16x16xf32>
      %98 = math.exp %97 : vector<16x16xf32>
      %cst_30 = arith.constant 1.000000e+00 : f32
      %99 = vector.broadcast %cst_30 : f32 to vector<16x16xf32>
      %100 = arith.subf %98, %99 : vector<16x16xf32>
      %101 = arith.select %95, %93, %100 : vector<16x16xi1>, vector<16x16xf32>
      %cst_31 = arith.constant 0.000000e+00 : f32
      %102 = vector.broadcast %cst_31 : f32 to vector<16x112xf32>
      %103 = tpu.concatenate %101, %102 in 1 : vector<16x16xf32>, vector<16x112xf32> -> vector<16x128xf32>
      %c0_32 = arith.constant 0 : index
      %c0_33 = arith.constant 0 : index
      %104 = vector.load %arg10[%c0_32, %c0_33] : memref<16x128xf32, #tpu.memory_space<vmem>>, vector<16x128xf32>
      tpu.vector_store %arg10[%c0_32, %c0_33], %103 {strides = array<i32>} : memref<16x128xf32, #tpu.memory_space<vmem>>, vector<16x128xf32>,
    } else {
    }
    return
  }
  func.func @transform_0(%arg0: i32) -> (i32, i32) {
    %c0_i32 = arith.constant 0 : i32
    %c0_i32_0 = arith.constant 0 : i32
    return %arg0, %c0_i32 : i32, i32
  }
  func.func @transform_1(%arg0: i32) -> (i32, i32) {
    %c0_i32 = arith.constant 0 : i32
    %c0_i32_0 = arith.constant 0 : i32
    return %c0_i32, %arg0 : i32, i32
  }
  func.func @transform_2(%arg0: i32) -> (i32, i32) {
    %c0_i32 = arith.constant 0 : i32
    %c0_i32_0 = arith.constant 0 : i32
    return %arg0, %c0_i32 : i32, i32
  }
  func.func @transform_3(%arg0: i32) -> (i32, i32) {
    %c0_i32 = arith.constant 0 : i32
    %c0_i32_0 = arith.constant 0 : i32
    return %arg0, %c0_i32 : i32, i32
  }
  func.func @transform_4(%arg0: i32) -> (i32, i32) {
    %c0_i32 = arith.constant 0 : i32
    %c0_i32_0 = arith.constant 0 : i32
    %c0_i32_1 = arith.constant 0 : i32
    return %c0_i32, %c0_i32_0 : i32, i32
  }
  func.func @transform_5(%arg0: i32) -> (i32, i32) {
    %c0_i32 = arith.constant 0 : i32
    %c0_i32_0 = arith.constant 0 : i32
    %c0_i32_1 = arith.constant 0 : i32
    return %c0_i32, %c0_i32_0 : i32, i32
  }
  func.func @transform_6(%arg0: i32) -> (i32, i32) {
    %c0_i32 = arith.constant 0 : i32
    %c0_i32_0 = arith.constant 0 : i32
    %c0_i32_1 = arith.constant 0 : i32
    return %c0_i32, %c0_i32_0 : i32, i32
  }
  func.func @transform_7(%arg0: i32) -> (i32, i32) {
    %c0_i32 = arith.constant 0 : i32
    %c0_i32_0 = arith.constant 0 : i32
    %c0_i32_1 = arith.constant 0 : i32
    return %c0_i32, %c0_i32_0 : i32, i32
  }
  func.func @transform_8(%arg0: i32) -> (i32, i32) {
    %c0_i32 = arith.constant 0 : i32
    %c0_i32_0 = arith.constant 0 : i32
    %c0_i32_1 = arith.constant 0 : i32
    return %c0_i32, %c0_i32_0 : i32, i32
  }
  func.func @transform_9(%arg0: i32) -> (i32, i32) {
    %c0_i32 = arith.constant 0 : i32
    %c0_i32_0 = arith.constant 0 : i32
    %c0_i32_1 = arith.constant 0 : i32
    return %c0_i32, %c0_i32_0 : i32, i32
  }
}

</mosaic_0001>

<bundles_post_ra>
// kernel: tpu_custom_call.1
= control target key start
LH: loop header
LB: loop body
LE: loop exit
PB: predicated region body
PF: predicated region fallthrough
CT: control target
= control target key end

     0   :  { %14 = vsyncpa [#allocation4], 0  ;;  %s3380_s30 = smov 0   ;;  %s4522_s0 = inlined_call_operand.vmem [shape: s32[384,1], index: 0, kind: input, shape index: {}]   ;;  %s4523_s1 = inlined_call_operand.vmem [shape: s32[1,384], index: 1, kind: input, shape index: {}]   ;;  %s4524_s2 = inlined_call_operand.vmem [shape: s32[384,1], index: 2, kind: input, shape index: {}]   ;;  %s4525_s3 = inlined_call_operand.vmem [shape: f32[384,1], index: 3, kind: input, shape index: {}]   ;;  %s4526_s4 = inlined_call_operand.vmem [shape: f32[16,16], index: 4, kind: input, shape index: {}]   ;;  %s4527_s5 = inlined_call_operand.vmem [shape: f32[16,48], index: 5, kind: input, shape index: {}]   ;;  %s4528_s6 = inlined_call_operand.vmem [shape: f32[16,12], index: 6, kind: input, shape index: {}]   ;;  %s4529_s7 = inlined_call_operand.vmem [shape: f32[16,16], index: 7, kind: input, shape index: {}]   ;;  %s4530_s8 = inlined_call_operand.vmem [shape: f32[1,16], index: 8, kind: input, shape index: {}]   ;;  %s4531_s9 = inlined_call_operand.hbm [shape: f32[16,128], index: 9, kind: output, shape index: {}]  }
   0x1 LB: > { %s3386_s10 = sadd.s32 4294967295, %s3314_s30   ;;  %p2650_p0 = scmp.ge.s32.totalorder %s3314_s30, 1  ;;  %s3314_s30 = sphi %s3380_s30, %s20_s30  }
   0x2   : > { %p314_p1 = scmp.lt.s32.totalorder %s3314_s30, 4 }
   0x4   : > { %p315_p2 = pnand %p2650_p0, %p314_p1 }
   0x6   : > { %318 = sbr.rel (%p315_p2) target bundleno = 1691 (0x69b), region = 56 }
   0xd   : > { %s2651_s7 = sshll.u32 %s3386_s10, 4  ;;  %p364_p3 = scmp.lt.s32.totalorder %s3386_s10, 2 }
   0xe   : > { %p359_p4 = scmp.lt.s32.totalorder %s2651_s7, 47  ;;  %p2657_p5 = scmp.ne.s32.totalorder %s3386_s10, 0 }
   0xf   : > { %s3393_s8 = scalar_select %p364_p3, %s3386_s10, 2 }
  0x10   : > { %s4664_s7 = smov (!%p359_p4, %s2651_s7), 47  ;;  %382 = sbr.rel (%p2657_p5) target bundleno = 23 (0x17), region = 60 }
  0x11   : > { %s366_s13 = scalar_lea.vmem %s4523_s1, %s3393_s8  ;;  %s2652_s14 = sshll.u32 %s4664_s7, 3  ;;  %vm383_vm0 = vcmask (!%p2657_p5), 130048   ;;  %v3316_v0 = vmov (!%p2657_p5), 0.0  }
  0x12   : > { %s3402_s17 = scalar_lea.vmem %s4522_s0, %s2652_s14  ;;  %s3407_s20 = scalar_lea.vmem %s4524_s2, %s2652_s14  ;;  %384 = vst.msk [vmem:[#allocation2] sm:$0xff] (!%p2657_p5), %vm383_vm0, %v3316_v0  ;;  %385 = vst.msk [vmem:[#allocation2 + $0x8] sm:$0xff] (!%p2657_p5), %vm383_vm0, %v3316_v0 }
  0x13   : > { %s3412_s23 = scalar_lea.vmem %s4525_s3, %s2652_s14 }
  0x17 PF: > { %v390_v1 = vld [vmem:[%s3402_s17 + $0x10] sm:$0xff]  ;;  %v388_v2 = vld [vmem:[%s3402_s17] sm:$0xff]  ;;  %v4533_v3 = vmov 0   ;;  %v391_v4 = vld [vmem:[%s3402_s17 + $0x18] sm:$0xff]  ;;  %v4551_v37 = vmov 2   ;;  %v4535_v38 = vmov 1   ;;  %v4532_v39 = vlaneseq }
  0x18   : > { %3016 = vset.pattern.permute.xlu1 %v4533_v3  ;;  %3015 = vset.pattern.permute.xlu0 %v4533_v3  ;;  %v389_v5 = vld [vmem:[%s3402_s17 + $0x8] sm:$0xff]  ;;  %v392_v7 = vld [vmem:[%s3402_s17 + $0x20] sm:$0xff]  ;;  %v395_v9 = vld [vmem:[%s3402_s17 + $0x38] sm:$0xff]  ;;  %vm502_vm1 = vcmask 130048   ;;  %v3320_v43 = vmov 0.0   ;;  %s3322_s18 = smov 112  }
  0x19   : > { %413 = vperm.xlu1 %3016, %v390_v1   ;;  %407 = vperm.xlu0 %3015, %v388_v2   ;;  %v393_v6 = vld [vmem:[%s3402_s17 + $0x28] sm:$0xff]  ;;  %v386_v8 = vld [vmem:[%s4526_s4] sm:$0xff]  ;;  %v394_v10 = vld [vmem:[%s3402_s17 + $0x30] sm:$0xff]  ;;  %v3458_v40 = vand.u32 127, %v4532_v39  ;;  %s3323_s19 = smov 124   ;;  %p2743_p6 = scmp.ne.s32.totalorder %s3386_s10, 2 }
  0x1a   : > { %v387_v11 = vld [vmem:[%s4526_s4 + $0x8] sm:$0xff]  ;;  %v396_v14 = vld [vmem:[%s3402_s17 + $0x40] sm:$0xff]  ;;  %v399_v15 = vld [vmem:[%s3402_s17 + $0x58] sm:$0xff] }
  0x1b   : > { %v2941_v12 = vpack.c.bf16 %v387_v11, %v386_v8  ;;  %v397_v13 = vld [vmem:[%s3402_s17 + $0x48] sm:$0xff]  ;;  %v398_v16 = vld [vmem:[%s3402_s17 + $0x50] sm:$0xff]  ;;  %v400_v18 = vld [vmem:[%s3402_s17 + $0x60] sm:$0xff] }
  0x1c   : > { %v401_v17 = vld [vmem:[%s3402_s17 + $0x68] sm:$0xff]  ;;  %v403_v19 = vld [vmem:[%s3402_s17 + $0x78] sm:$0xff]  ;;  %v402_v20 = vld [vmem:[%s3402_s17 + $0x70] sm:$0xff]  ;;  %s3321_s17 = smov 96  }
  0x1d   : > { %416 = vperm.xlu1 %3016, %v391_v4   ;;  %410 = vperm.xlu0 %3015, %v389_v5   ;;  %v892_v21 = vld [vmem:[%s3407_s20 + $0x8] sm:$0xff]  ;;  %v891_v22 = vld [vmem:[%s3407_s20] sm:$0xff]  ;;  %v894_v23 = vld [vmem:[%s3407_s20 + $0x18] sm:$0xff] }
  0x1e   : > { %2942 = vmatprep.subr.bf16.mxu0 %v2941_v12  ;;  %2985 = vmatprep.subr.bf16.mxu1 %v2941_v12  ;;  %v893_v24 = vld [vmem:[%s3407_s20 + $0x10] sm:$0xff]  ;;  %v896_v25 = vld [vmem:[%s3407_s20 + $0x28] sm:$0xff]  ;;  %v895_v26 = vld [vmem:[%s3407_s20 + $0x20] sm:$0xff] }
  0x1f   : > { %2944 = vmatpush3.bf16.msra.mxu0 %v2941_v12  ;;  %2986 = vmatpush3.bf16.msra.mxu1 %v2941_v12  ;;  %v898_v27 = vld [vmem:[%s3407_s20 + $0x38] sm:$0xff]  ;;  %v897_v28 = vld [vmem:[%s3407_s20 + $0x30] sm:$0xff]  ;;  %v900_v29 = vld [vmem:[%s3407_s20 + $0x48] sm:$0xff] }
  0x20   : > { %v899_v30 = vld [vmem:[%s3407_s20 + $0x40] sm:$0xff]  ;;  %v902_v31 = vld [vmem:[%s3407_s20 + $0x58] sm:$0xff]  ;;  %v901_v32 = vld [vmem:[%s3407_s20 + $0x50] sm:$0xff] }
  0x21   : > { %422 = vperm.xlu1 %3016, %v393_v6   ;;  %419 = vperm.xlu0 %3015, %v392_v7   ;;  %v904_v33 = vld [vmem:[%s3407_s20 + $0x68] sm:$0xff]  ;;  %v903_v34 = vld [vmem:[%s3407_s20 + $0x60] sm:$0xff]  ;;  %v906_v35 = vld [vmem:[%s3407_s20 + $0x78] sm:$0xff] }
  0x22   : > { %v905_v36 = vld [vmem:[%s3407_s20 + $0x70] sm:$0xff]  ;;  %s3324_s20 = smov 120  }
  0x25   : > { %428 = vperm.xlu1 %3016, %v395_v9   ;;  %425 = vperm.xlu0 %3015, %v394_v10  }
  0x29   : > { %434 = vperm.xlu1 %3016, %v397_v13   ;;  %431 = vperm.xlu0 %3015, %v396_v14  }
  0x2d   : > { %440 = vperm.xlu1 %3016, %v399_v15   ;;  %437 = vperm.xlu0 %3015, %v398_v16  }
  0x31   : > { %446 = vperm.xlu1 %3016, %v401_v17   ;;  %443 = vperm.xlu0 %3015, %v400_v18  }
  0x35   : > { %452 = vperm.xlu1 %3016, %v403_v19   ;;  %449 = vperm.xlu0 %3015, %v402_v20  }
  0x39   : > { %911 = vperm.xlu1 %3016, %v892_v21   ;;  %908 = vperm.xlu0 %3015, %v891_v22  }
  0x3d   : > { %917 = vperm.xlu1 %3016, %v894_v23   ;;  %914 = vperm.xlu0 %3015, %v893_v24  }
  0x41   : > { %923 = vperm.xlu1 %3016, %v896_v25   ;;  %920 = vperm.xlu0 %3015, %v895_v26  }
  0x45   : > { %929 = vperm.xlu1 %3016, %v898_v27   ;;  %926 = vperm.xlu0 %3015, %v897_v28  }
  0x49   : > { %935 = vperm.xlu1 %3016, %v900_v29   ;;  %932 = vperm.xlu0 %3015, %v899_v30  }
  0x4d   : > { %941 = vperm.xlu1 %3016, %v902_v31   ;;  %938 = vperm.xlu0 %3015, %v901_v32  }
  0x51   : > { %947 = vperm.xlu1 %3016, %v904_v33   ;;  %944 = vperm.xlu0 %3015, %v903_v34  }
  0x55   : > { %953 = vperm.xlu1 %3016, %v906_v35   ;;  %950 = vperm.xlu0 %3015, %v905_v36  }
  0x59   : > { %3023 = vset.pattern.permute.xlu1 %v4551_v37  ;;  %3017 = vset.pattern.permute.xlu0 %v4535_v38 }
  0x98   : > { %v414_v41 = vpop.permute.xlu1 %413  ;;  %v408_v42 = vpop.permute.xlu0 %407 }
  0x99   : > { %vm454_vm2 = vcmp.eq.s32.totalorder %v3458_v40, %v408_v42  ;;  %vm456_vm3 = vcmp.eq.s32.totalorder %v3458_v40, %v414_v41 }
  0x9a   : > { %v2658_v44 = vsel %vm454_vm2, 1.0, %v3320_v43  ;;  %v2660_v47 = vsel %vm456_vm3, 1.0, %v3320_v43 }
  0x9b   : > { %2826 = vmatprep.mubr.msk.f32.mxu0 %vm502_vm1, %v2658_v44 }
  0x9c   : > { %v417_v45 = vpop.permute.xlu1 %416  ;;  %v411_v46 = vpop.permute.xlu0 %410 }
  0x9d   : > { %vm457_vm4 = vcmp.eq.s32.totalorder %v3458_v40, %v417_v45  ;;  %vm455_vm5 = vcmp.eq.s32.totalorder %v3458_v40, %v411_v46 }
  0x9e   : > { %v2659_v48 = vsel %vm455_vm5, 1.0, %v3320_v43  ;;  %v2661_v49 = vsel %vm457_vm4, 1.0, %v3320_v43 }
  0x9f   : > { %2827 = vmatmul.mubr.msk.f32.vlgmr.msra.gmra.mrb[0].mxu0 %vm502_vm1, %v2659_v48 }
  0xa0   : > { %v423_v50 = vpop.permute.xlu1 %422  ;;  %v420_v51 = vpop.permute.xlu0 %419  ;;  %2829 = vmatprep.mubr.msk.f32.mxu0 %vm502_vm1, %v2660_v47 }
  0xa1   : > { %vm459_vm6 = vcmp.eq.s32.totalorder %v3458_v40, %v423_v50  ;;  %vm458_vm7 = vcmp.eq.s32.totalorder %v3458_v40, %v420_v51 }
  0xa2   : > { %v2662_v52 = vsel %vm458_vm7, 1.0, %v3320_v43  ;;  %v2663_v53 = vsel %vm459_vm6, 1.0, %v3320_v43 }
  0xa3   : > { %2830 = vmatmul.mubr.msk.f32.gmra.mrb[2].mxu0 %vm502_vm1, %v2661_v49 }
  0xa4   : > { %v429_v54 = vpop.permute.xlu1 %428  ;;  %v426_v55 = vpop.permute.xlu0 %425  ;;  %2832 = vmatprep.mubr.msk.f32.mxu0 %vm502_vm1, %v2662_v52 }
  0xa5   : > { %vm461_vm8 = vcmp.eq.s32.totalorder %v3458_v40, %v429_v54  ;;  %vm460_vm9 = vcmp.eq.s32.totalorder %v3458_v40, %v426_v55 }
  0xa6   : > { %v2664_v56 = vsel %vm460_vm9, 1.0, %v3320_v43  ;;  %v2665_v57 = vsel %vm461_vm8, 1.0, %v3320_v43 }
  0xa7   : > { %2833 = vmatmul.mubr.msk.f32.gmra.mrb[4].mxu0 %vm502_vm1, %v2663_v53 }
  0xa8   : > { %v435_v58 = vpop.permute.xlu1 %434  ;;  %v432_v59 = vpop.permute.xlu0 %431  ;;  %2835 = vmatprep.mubr.msk.f32.mxu0 %vm502_vm1, %v2664_v56 }
  0xa9   : > { %vm463_vm10 = vcmp.eq.s32.totalorder %v3458_v40, %v435_v58  ;;  %vm462_vm11 = vcmp.eq.s32.totalorder %v3458_v40, %v432_v59 }
  0xaa   : > { %v2666_v60 = vsel %vm462_vm11, 1.0, %v3320_v43  ;;  %v2667_v61 = vsel %vm463_vm10, 1.0, %v3320_v43 }
  0xab   : > { %2836 = vmatmul.mubr.msk.f32.gmra.mrb[6].mxu0 %vm502_vm1, %v2665_v57 }
  0xac   : > { %v441_v62 = vpop.permute.xlu1 %440  ;;  %v438_v63 = vpop.permute.xlu0 %437  ;;  %2838 = vmatprep.mubr.msk.f32.mxu0 %vm502_vm1, %v2666_v60 }
  0xad   : > { %vm465_vm12 = vcmp.eq.s32.totalorder %v3458_v40, %v441_v62  ;;  %vm464_vm13 = vcmp.eq.s32.totalorder %v3458_v40, %v438_v63 }
  0xae   : > { %v2669_v0 = vsel %vm465_vm12, 1.0, %v3320_v43  ;;  %v2668_v1 = vsel %vm464_vm13, 1.0, %v3320_v43 }
  0xaf   : > { %2839 = vmatmul.mubr.msk.f32.gmra.mrb[8].mxu0 %vm502_vm1, %v2667_v61  ;;  %2841 = vmatprep.mubr.msk.f32.mxu1 %vm502_vm1, %v2668_v1 }
  0xb0   : > { %v447_v2 = vpop.permute.xlu1 %446  ;;  %v444_v4 = vpop.permute.xlu0 %443  ;;  %2842 = vmatmul.mubr.msk.f32.vlgmr.msra.gmra.mrb[0].mxu1 %vm502_vm1, %v2669_v0 }
  0xb1   : > { %vm467_vm14 = vcmp.eq.s32.totalorder %v3458_v40, %v447_v2  ;;  %vm466_vm15 = vcmp.eq.s32.totalorder %v3458_v40, %v444_v4 }
  0xb2   : > { %v2671_v5 = vsel %vm467_vm14, 1.0, %v3320_v43  ;;  %v2670_v6 = vsel %vm466_vm15, 1.0, %v3320_v43 }
  0xb3   : > { %2844 = vmatprep.mubr.msk.f32.mxu1 %vm502_vm1, %v2670_v6 }
  0xb4   : > { %v453_v7 = vpop.permute.xlu1 %452  ;;  %v450_v8 = vpop.permute.xlu0 %449  ;;  %2845 = vmatmul.mubr.msk.f32.gmra.mrb[2].mxu1 %vm502_vm1, %v2671_v5 }
  0xb5   : > { %vm469_vm0 = vcmp.eq.s32.totalorder %v3458_v40, %v453_v7  ;;  %vm468_vm2 = vcmp.eq.s32.totalorder %v3458_v40, %v450_v8 }
  0xb6   : > { %v2673_v9 = vsel %vm469_vm0, 1.0, %v3320_v43  ;;  %v2672_v10 = vsel %vm468_vm2, 1.0, %v3320_v43 }
  0xb7   : > { %2847 = vmatprep.mubr.msk.f32.mxu1 %vm502_vm1, %v2672_v10  ;;  %v1419_v10 = vld [vmem:[%s4528_s6] sm:$0xff] }
  0xb8   : > { %v912_v11 = vpop.permute.xlu1 %911  ;;  %v909_v12 = vpop.permute.xlu0 %908  ;;  %2848 = vmatmul.mubr.msk.f32.gmra.mrb[4].mxu1 %vm502_vm1, %v2673_v9 }
  0xb9   : > { %vm956_vm3 = vcmp.eq.s32.totalorder %v3458_v40, %v912_v11  ;;  %vm955_vm4 = vcmp.eq.s32.totalorder %v3458_v40, %v909_v12  ;;  %v1420_v11 = vld [vmem:[%s4528_s6 + $0x8] sm:$0xff] }
  0xba   : > { %v2707_v13 = vsel %vm956_vm3, 1.0, %v3320_v43  ;;  %v2706_v14 = vsel %vm955_vm4, 1.0, %v3320_v43  ;;  %v2949_v12 = vpack.c.bf16 %v1420_v11, %v1419_v10 }
  0xbb   : > { %v3512_v15 = vpack.i.bf16 %v2707_v13, %v2706_v14 }
  0xbc   : > { %v918_v16 = vpop.permute.xlu1 %917  ;;  %v915_v17 = vpop.permute.xlu0 %914  ;;  %2950 = vmatprep.subr.bf16.mxu0 %v2949_v12 }
  0xbd   : > { %vm958_vm5 = vcmp.eq.s32.totalorder %v3458_v40, %v918_v16  ;;  %vm957_vm6 = vcmp.eq.s32.totalorder %v3458_v40, %v915_v17  ;;  %3025 = vperm.xlu1 %3023, %v3512_v15   ;;  %3019 = vperm.xlu0 %3017, %v3512_v15  }
  0xbe   : > { %v2709_v18 = vsel %vm958_vm5, 1.0, %v3320_v43  ;;  %v2708_v19 = vsel %vm957_vm6, 1.0, %v3320_v43  ;;  %2952 = vmatpush3.bf16.msra.mxu0 %v2949_v12 }
  0xbf   : > { %v3520_v20 = vpack.i.bf16 %v2709_v18, %v2708_v19 }
  0xc0   : > { %v924_v21 = vpop.permute.xlu1 %923  ;;  %v921_v22 = vpop.permute.xlu0 %920 }
  0xc1   : > { %vm960_vm7 = vcmp.eq.s32.totalorder %v3458_v40, %v924_v21  ;;  %vm959_vm8 = vcmp.eq.s32.totalorder %v3458_v40, %v921_v22  ;;  %3029 = vset.pattern.permute.xlu1 %v4535_v38  ;;  %3035 = vset.pattern.permute.xlu0 %v4551_v37 }
  0xc2   : > { %v2711_v23 = vsel %vm960_vm7, 1.0, %v3320_v43  ;;  %v2710_v24 = vsel %vm959_vm8, 1.0, %v3320_v43  ;;  %3037 = vperm.xlu0 %3035, %v3520_v20   ;;  %3031 = vperm.xlu1 %3029, %v3520_v20  }
  0xc3   : > { %v3041_v25 = vpack.i.bf16 %v2711_v23, %v2710_v24 }
  0xc4   : > { %v930_v26 = vpop.permute.xlu1 %929  ;;  %v927_v27 = vpop.permute.xlu0 %926 }
  0xc5   : > { %vm962_vm9 = vcmp.eq.s32.totalorder %v3458_v40, %v930_v26  ;;  %vm961_vm10 = vcmp.eq.s32.totalorder %v3458_v40, %v927_v27 }
  0xc6   : > { %v2713_v28 = vsel %vm962_vm9, 1.0, %v3320_v43  ;;  %v2712_v29 = vsel %vm961_vm10, 1.0, %v3320_v43  ;;  %3042 = vperm.xlu1 %3029, %v3041_v25   ;;  %3052 = vset.pattern.permute.xlu0 %v4535_v38 }
  0xc7   : > { %v3053_v30 = vpack.i.bf16 %v2713_v28, %v2712_v29 }
  0xc8   : > { %v936_v31 = vpop.permute.xlu1 %935  ;;  %v933_v32 = vpop.permute.xlu0 %932 }
  0xc9   : > { %vm964_vm11 = vcmp.eq.s32.totalorder %v3458_v40, %v936_v31  ;;  %vm963_vm12 = vcmp.eq.s32.totalorder %v3458_v40, %v933_v32  ;;  %3054 = vperm.xlu0 %3052, %v3053_v30  }
  0xca   : > { %v2715_v33 = vsel %vm964_vm11, 1.0, %v3320_v43  ;;  %v2714_v34 = vsel %vm963_vm12, 1.0, %v3320_v43  ;;  %3046 = vset.pattern.permute.xlu1 %v4551_v37 }
  0xcb   : > { %3048 = vperm.xlu1 %3046, %v3041_v25   ;;  %v3070_v35 = vpack.i.bf16 %v2715_v33, %v2714_v34 }
  0xcc   : > { %v942_v36 = vpop.permute.xlu1 %941  ;;  %v939_v41 = vpop.permute.xlu0 %938 }
  0xcd   : > { %3069 = vset.pattern.permute.xlu0 %v4551_v37  ;;  %vm966_vm13 = vcmp.eq.s32.totalorder %v3458_v40, %v942_v36  ;;  %vm965_vm14 = vcmp.eq.s32.totalorder %v3458_v40, %v939_v41 }
  0xce   : > { %3071 = vperm.xlu0 %3069, %v3070_v35   ;;  %v2717_v47 = vsel %vm966_vm13, 1.0, %v3320_v43  ;;  %v2716_v48 = vsel %vm965_vm14, 1.0, %v3320_v43 }
  0xcf   : > { %3059 = vperm.xlu1 %3046, %v3053_v30   ;;  %v3075_v54 = vpack.i.bf16 %v2717_v47, %v2716_v48 }
  0xd0   : > { %v948_v42 = vpop.permute.xlu1 %947  ;;  %v945_v44 = vpop.permute.xlu0 %944 }
  0xd1   : > { %vm968_vm15 = vcmp.eq.s32.totalorder %v3458_v40, %v948_v42  ;;  %vm967_vm0 = vcmp.eq.s32.totalorder %v3458_v40, %v945_v44 }
  0xd2   : > { %v2719_v45 = vsel %vm968_vm15, 1.0, %v3320_v43  ;;  %v2718_v46 = vsel %vm967_vm0, 1.0, %v3320_v43  ;;  %3086 = vset.pattern.permute.xlu0 %v4535_v38 }
  0xd3   : > { %3063 = vset.pattern.permute.xlu1 %v4535_v38  ;;  %v3087_v49 = vpack.i.bf16 %v2719_v45, %v2718_v46 }
  0xd4   : > { %v954_v50 = vpop.permute.xlu1 %953  ;;  %3065 = vperm.xlu1 %3063, %v3070_v35   ;;  %v951_v51 = vpop.permute.xlu0 %950 }
  0xd5   : > { %vm970_vm2 = vcmp.eq.s32.totalorder %v3458_v40, %v954_v50  ;;  %vm969_vm3 = vcmp.eq.s32.totalorder %v3458_v40, %v951_v51  ;;  %3088 = vperm.xlu0 %3086, %v3087_v49   ;;  %v696_v40 = vld [vmem:[%s4527_s5] sm:$0xff] }
  0xd6   : > { %v2721_v52 = vsel %vm970_vm2, 1.0, %v3320_v43  ;;  %v2720_v53 = vsel %vm969_vm3, 1.0, %v3320_v43  ;;  %v697_v43 = vld [vmem:[%s4527_s5 + $0x8] sm:$0xff] }
  0xd7   : > { %v3104_v55 = vpack.i.bf16 %v2721_v52, %v2720_v53  ;;  %v2945_v56 = vpack.c.bf16 %v697_v43, %v696_v40 }
  0xd8   : > { %3076 = vperm.xlu1 %3063, %v3075_v54  }
  0xd9   : > { %3103 = vset.pattern.permute.xlu0 %v4551_v37  ;;  %2946 = vmatprep.subr.bf16.mxu1 %v2945_v56 }
  0xda   : > { %3105 = vperm.xlu0 %3103, %v3104_v55   ;;  %2948 = vmatpush3.bf16.msra.mxu1 %v2945_v56 }
  0xdc   : > { %3080 = vset.pattern.permute.xlu1 %v4551_v37 }
  0xdd   : > { %3082 = vperm.xlu1 %3080, %v3075_v54  }
  0xde   : > { %3120 = vset.pattern.permute.xlu0 %v4533_v3 }
  0xdf   : > { %3122 = vperm.xlu0 %3120, %v3041_v25  }
  0xe1   : > { %3093 = vperm.xlu1 %3080, %v3087_v49  }
  0xe3   : > { %3132 = vperm.xlu0 %3120, %v3070_v35  }
  0xe5   : > { %3097 = vset.pattern.permute.xlu1 %v4535_v38 }
  0xe6   : > { %3099 = vperm.xlu1 %3097, %v3104_v55  }
  0xe7   : > { %3142 = vperm.xlu0 %3120, %v3087_v49  }
  0xea   : > { %3109 = vset.pattern.permute.xlu1 %v4533_v3 }
  0xeb   : > { %3111 = vperm.xlu1 %3109, %v3512_v15  }
  0xef   : > { %3116 = vperm.xlu1 %3109, %v3520_v20  }
  0xf3   : > { %3127 = vperm.xlu1 %3109, %v3053_v30  }
  0xf7   : > { %3137 = vperm.xlu1 %3109, %v3075_v54  }
  0xfb   : > { %3147 = vperm.xlu1 %3109, %v3104_v55  }
 0x13c   : > { %v3590_v13 = vpop.permute.xlu1 %3025  ;;  %v3592_v14 = vpop.permute.xlu0 %3019 }
 0x13d   : > { %v3028_v16 = vunpack.i.h.bf16 %v3590_v13  ;;  %v3022_v17 = vunpack.i.h.bf16 %v3592_v14  ;;  %v3027_v23 = vunpack.i.l.bf16 %v3590_v13  ;;  %v3021_v24 = vunpack.i.l.bf16 %v3592_v14 }
 0x141   : > { %v3594_v15 = vpop.permute.xlu1 %3031  ;;  %v3614_v25 = vpop.permute.xlu0 %3037 }
 0x142   : > { %v3034_v30 = vunpack.i.h.bf16 %v3594_v15  ;;  %v3040_v31 = vunpack.i.h.bf16 %v3614_v25  ;;  %v3033_v41 = vunpack.i.l.bf16 %v3594_v15  ;;  %v3039_v48 = vunpack.i.l.bf16 %v3614_v25 }
 0x145   : > { %v3608_v22 = vpop.permute.xlu1 %3042 }
 0x146   : > { %v4561_v49 = vunpack.i.l.bf16 %v3608_v22  ;;  %v4564_v55 = vunpack.i.h.bf16 %v3608_v22  ;;  %v4609_v15 = vunpack.i.h.bf16 %v3608_v22 }
 0x148   : > { %v3670_v54 = vpop.permute.xlu0 %3054 }
 0x14a   : > { %v3630_v32 = vpop.permute.xlu1 %3048 }
 0x14b   : > { %v4560_v42 = vunpack.i.h.bf16 %v3630_v32  ;;  %v4559_v40 = vunpack.i.l.bf16 %v3630_v32  ;;  %v4611_v25 = vunpack.i.h.bf16 %v3630_v32 }
 0x14e   : > { %v3676_v43 = vpop.permute.xlu1 %3059 }
 0x14f   : > { %v4555_v11 = vunpack.i.l.bf16 %v3676_v43 }
 0x172   : > { %v2828_v57 = vpop.f32.mrb[0].mxu0 }
 0x173   : > { %v617_v58 = vpop.f32.mrb[1].mxu0 }
 0x174   : > { %2854 = vmatprep.mubr.msk.f32.mxu1 %vm502_vm1, %v617_v58 }
 0x175   : > { %2855 = vmatmul.mubr.msk.f32.vlgmr.msra.gmra.mrb[6].mxu1 %vm502_vm1, %v2828_v57 }
 0x176   : > { %v2831_v59 = vpop.f32.mrb[2].mxu0 }
 0x177   : > { %v627_v60 = vpop.f32.mrb[3].mxu0 }
 0x178   : > { %2857 = vmatprep.mubr.msk.f32.mxu1 %vm502_vm1, %v627_v60  ;;  %v4558_v60 = vunpack.i.h.bf16 %v3670_v54 }
 0x179   : > { %2858 = vmatmul.mubr.msk.f32.gmra.mrb[8].mxu1 %vm502_vm1, %v2831_v59 }
 0x17a   : > { %v2834_v61 = vpop.f32.mrb[4].mxu0 }
 0x17b   : > { %v637_v62 = vpop.f32.mrb[5].mxu0 }
 0x17c   : > { %2860 = vmatprep.mubr.msk.f32.mxu1 %vm502_vm1, %v637_v62  ;;  %v3692_v62 = vpop.permute.xlu0 %3071 }
 0x17d   : > { %2861 = vmatmul.mubr.msk.f32.gmra.mrb[10].mxu1 %vm502_vm1, %v2834_v61  ;;  %v4556_v61 = vunpack.i.h.bf16 %v3676_v43 }
 0x17e   : > { %v2837_v63 = vpop.f32.mrb[6].mxu0 }
 0x17f   : > { %v647_v0 = vpop.f32.mrb[7].mxu0 }
 0x180   : > { %2863 = vmatprep.mubr.msk.f32.mxu1 %vm502_vm1, %v647_v0 }
 0x181   : > { %2864 = vmatmul.mubr.msk.f32.gmra.mrb[12].mxu1 %vm502_vm1, %v2837_v63 }
 0x182   : > { %v2840_v1 = vpop.f32.mrb[8].mxu0 }
 0x183   : > { %v657_v2 = vpop.f32.mrb[9].mxu0  ;;  %v2843_v4 = vpop.f32.mrb[0].mxu1 }
 0x184   : > { %2866 = vmatprep.mubr.msk.f32.mxu1 %vm502_vm1, %v657_v2  ;;  %v667_v5 = vpop.f32.mrb[1].mxu1 }
 0x185   : > { %2867 = vmatmul.mubr.msk.f32.gmra.mrb[14].mxu1 %vm502_vm1, %v2840_v1 }
 0x186   : > { %2869 = vmatprep.mubr.msk.f32.mxu1 %vm502_vm1, %v667_v5  ;;  %v4550_v5 = vunpack.i.h.bf16 %v3692_v62 }
 0x187   : > { %v2846_v6 = vpop.f32.mrb[2].mxu1 }
 0x188   : > { %v677_v7 = vpop.f32.mrb[3].mxu1 }
 0x189   : > { %2870 = vmatmul.mubr.msk.f32.gmra.mrb[16].mxu1 %vm502_vm1, %v2843_v4  ;;  %v4557_v4 = vunpack.i.l.bf16 %v3670_v54 }
 0x18a   : > { %2872 = vmatprep.mubr.msk.f32.mxu1 %vm502_vm1, %v677_v7 }
 0x18b   : > { %v2849_v8 = vpop.f32.mrb[4].mxu1 }
 0x18c   : > { %v687_v9 = vpop.f32.mrb[5].mxu1 }
 0x18d   : > { %2873 = vmatmul.mubr.msk.f32.gmra.mrb[18].mxu1 %vm502_vm1, %v2846_v6  ;;  %v3708_v6 = vpop.permute.xlu1 %3065 }
 0x18e   : > { %2875 = vmatprep.mubr.msk.f32.mxu1 %vm502_vm1, %v687_v9  ;;  %v4553_v12 = vunpack.i.l.bf16 %v3708_v6 }
 0x191   : > { %2876 = vmatmul.mubr.msk.f32.gmra.mrb[20].mxu1 %vm502_vm1, %v2849_v8 }
 0x248   : > { %v3598_v18 = vpop.f32.mrb[6].mxu1 }
 0x249   : > { %v1164_v19 = vmul.f32 %v3022_v17, %v3598_v18  ;;  %v1324_v20 = vmul.f32 %v3028_v16, %v3598_v18  ;;  %v3606_v21 = vpop.f32.mrb[7].mxu1 }
 0x24a   : > { %v1163_v27 = vmul.f32 %v3021_v24, %v3606_v21  ;;  %v1323_v28 = vmul.f32 %v3027_v23, %v3606_v21 }
 0x24b   : > { %1357 = vrot.lane.b32.xlu0 %v1324_v20, %s3321_s17  ;;  %1197 = vrot.lane.b32.xlu1 %v1164_v19, %s3322_s18 }
 0x24c   : > { %v3616_v26 = vpop.f32.mrb[8].mxu1 }
 0x24d   : > { %v3624_v29 = vpop.f32.mrb[9].mxu1  ;;  %v1166_v34 = vmul.f32 %v3034_v30, %v3616_v26  ;;  %v1326_v35 = vmul.f32 %v3040_v31, %v3616_v26 }
 0x24e   : > { %v1165_v45 = vmul.f32 %v3033_v41, %v3624_v29  ;;  %v1325_v51 = vmul.f32 %v3039_v48, %v3624_v29 }
 0x24f   : > { %1355 = vrot.lane.b32.xlu0 %v1323_v28, %s3321_s17  ;;  %1195 = vrot.lane.b32.xlu1 %v1163_v27, %s3322_s18  ;;  %v3730_v27 = vpop.permute.xlu1 %3076  ;;  %v4549_v28 = vunpack.i.l.bf16 %v3692_v62 }
 0x250   : > { %v3632_v33 = vpop.f32.mrb[10].mxu1 }
 0x251   : > { %v3640_v36 = vpop.f32.mrb[11].mxu1  ;;  %v1328_v46 = vmul.f32 %v4560_v42, %v3632_v33  ;;  %v1168_v57 = vmul.f32 %v4564_v55, %v3632_v33 }
 0x252   : > { %v1167_v52 = vmul.f32 %v4561_v49, %v3640_v36  ;;  %v1327_v58 = vmul.f32 %v4559_v40, %v3640_v36 }
 0x253   : > { %1361 = vrot.lane.b32.xlu1 %v1326_v35, %s3321_s17  ;;  %1201 = vrot.lane.b32.xlu0 %v1166_v34, %s3322_s18  ;;  %v4554_v34 = vunpack.i.h.bf16 %v3708_v6 }
 0x254   : > { %v3646_v44 = vpop.f32.mrb[12].mxu1 }
 0x255   : > { %v3654_v47 = vpop.f32.mrb[13].mxu1  ;;  %v1170_v0 = vmul.f32 %v4558_v60, %v3646_v44  ;;  %v1330_v1 = vmul.f32 %v4556_v61, %v3646_v44 }
 0x256   : > { %v1169_v8 = vmul.f32 %v4557_v4, %v3654_v47  ;;  %v1329_v19 = vmul.f32 %v4555_v11, %v3654_v47 }
 0x257   : > { %1199 = vrot.lane.b32.xlu1 %v1165_v45, %s3322_s18  ;;  %1365 = vrot.lane.b32.xlu0 %v1328_v46, %s3321_s17  ;;  %v4548_v46 = vunpack.i.h.bf16 %v3730_v27 }
 0x258   : > { %v3660_v50 = vpop.f32.mrb[14].mxu1 }
 0x259   : > { %v3668_v53 = vpop.f32.mrb[15].mxu1  ;;  %v1332_v9 = vmul.f32 %v4550_v5, %v3660_v50  ;;  %v1172_v35 = vmul.f32 %v4554_v34, %v3660_v50 }
 0x25a   : > { %v1171_v20 = vmul.f32 %v4553_v12, %v3668_v53  ;;  %v1331_v45 = vmul.f32 %v4549_v28, %v3668_v53 }
 0x25b   : > { %1359 = vrot.lane.b32.xlu1 %v1325_v51, %s3321_s17  ;;  %1203 = vrot.lane.b32.xlu0 %v1167_v52, %s3322_s18  ;;  %v4547_v51 = vunpack.i.l.bf16 %v3730_v27  ;;  %v3746_v52 = vpop.permute.xlu1 %3082 }
 0x25c   : > { %v3678_v56 = vpop.f32.mrb[16].mxu1 }
 0x25d   : > { %v3686_v59 = vpop.f32.mrb[17].mxu1 }
 0x25f   : > { %1205 = vrot.lane.b32.xlu1 %v1168_v57, %s3322_s18  ;;  %1363 = vrot.lane.b32.xlu0 %v1327_v58, %s3321_s17  ;;  %v1174_v57 = vmul.f32 %v4548_v46, %v3678_v56  ;;  %v1173_v58 = vmul.f32 %v4547_v51, %v3686_v59  ;;  %v1960_v51 = vld [vmem:[%s3412_s23 + $0x50] sm:$0xff] }
 0x260   : > { %v3694_v63 = vpop.f32.mrb[18].mxu1 }
 0x261   : > { %v3702_v2 = vpop.f32.mrb[19].mxu1 }
 0x263   : > { %1369 = vrot.lane.b32.xlu1 %v1330_v1, %s3321_s17  ;;  %1209 = vrot.lane.b32.xlu0 %v1170_v0, %s3322_s18  ;;  %v4546_v0 = vunpack.i.h.bf16 %v3746_v52  ;;  %v4541_v1 = vunpack.i.l.bf16 %v3746_v52 }
 0x264   : > { %v3710_v7 = vpop.f32.mrb[20].mxu1 }
 0x265   : > { %v3718_v10 = vpop.f32.mrb[21].mxu1 }
 0x267   : > { %1207 = vrot.lane.b32.xlu1 %v1169_v8, %s3322_s18  ;;  %1373 = vrot.lane.b32.xlu0 %v1332_v9, %s3321_s17  ;;  %v3758_v8 = vpop.permute.xlu0 %3088  ;;  %v1334_v9 = vmul.f32 %v4546_v0, %v3678_v56  ;;  %v1961_v0 = vld [vmem:[%s3412_s23 + $0x58] sm:$0xff] }
 0x26b   : > { %1367 = vrot.lane.b32.xlu1 %v1329_v19, %s3321_s17  ;;  %1211 = vrot.lane.b32.xlu0 %v1171_v20, %s3322_s18  ;;  %v1333_v19 = vmul.f32 %v4541_v1, %v3686_v59  ;;  %v3766_v20 = vpop.permute.xlu1 %3093 }
 0x26c   : > { %v4540_v39 = vunpack.i.h.bf16 %v3766_v20  ;;  %v4539_v3 = vunpack.i.l.bf16 %v3766_v20 }
 0x26f   : > { %1213 = vrot.lane.b32.xlu1 %v1172_v35, %s3322_s18  ;;  %1371 = vrot.lane.b32.xlu0 %v1331_v45, %s3321_s17  ;;  %v4538_v35 = vunpack.i.h.bf16 %v3758_v8  ;;  %v4537_v45 = vunpack.i.l.bf16 %v3758_v8  ;;  %v3782_v38 = vpop.permute.xlu1 %3099 }
 0x273   : > { %1217 = vrot.lane.b32.xlu0 %v1174_v57, %s3322_s18  ;;  %1215 = vrot.lane.b32.xlu1 %v1173_v58, %s3322_s18  ;;  %v1176_v57 = vmul.f32 %v4538_v35, %v3694_v63  ;;  %v1175_v58 = vmul.f32 %v4537_v45, %v3702_v2  ;;  %v4543_v45 = vunpack.i.h.bf16 %v3782_v38  ;;  %v4542_v35 = vunpack.i.l.bf16 %v3782_v38  ;;  %v3828_v46 = vpop.permute.xlu1 %3111 }
 0x277   : > { %1377 = vrot.lane.b32.xlu0 %v1334_v9, %s3321_s17  ;;  %1375 = vrot.lane.b32.xlu1 %v1333_v19, %s3321_s17  ;;  %v1336_v9 = vmul.f32 %v4540_v39, %v3694_v63  ;;  %v1335_v19 = vmul.f32 %v4539_v3, %v3702_v2  ;;  %v1177_v3 = vmul.f32 %v4542_v35, %v3718_v10  ;;  %v1951_v35 = vld [vmem:[%s3412_s23 + $0x8] sm:$0xff]  ;;  %v3832_v28 = vpop.permute.xlu1 %3116 }
 0x278   : > { %v4568_v49 = vunpack.i.h.bf16 %v3832_v28 }
 0x27b   : > { %1221 = vrot.lane.b32.xlu0 %v1176_v57, %s3322_s18  ;;  %1219 = vrot.lane.b32.xlu1 %v1175_v58, %s3322_s18  ;;  %v3794_v57 = vpop.permute.xlu0 %3105  ;;  %v1178_v58 = vmul.f32 %v4543_v45, %v3710_v7  ;;  %v1950_v45 = vld [vmem:[%s3412_s23] sm:$0xff] }
 0x27c   : > { %v4544_v39 = vunpack.i.h.bf16 %v3794_v57  ;;  %v4545_v1 = vunpack.i.l.bf16 %v3794_v57 }
 0x27f   : > { %1381 = vrot.lane.b32.xlu0 %v1336_v9, %s3321_s17  ;;  %1379 = vrot.lane.b32.xlu1 %v1335_v19, %s3321_s17  ;;  %v1338_v9 = vmul.f32 %v4544_v39, %v3710_v7  ;;  %v1337_v19 = vmul.f32 %v4545_v1, %v3718_v10  ;;  %v1955_v39 = vld [vmem:[%s3412_s23 + $0x28] sm:$0xff]  ;;  %v1954_v1 = vld [vmem:[%s3412_s23 + $0x20] sm:$0xff] }
 0x283   : > { %1225 = vrot.lane.b32.xlu0 %v1178_v58, %s3322_s18  ;;  %1223 = vrot.lane.b32.xlu1 %v1177_v3, %s3322_s18  ;;  %v1953_v3 = vld [vmem:[%s3412_s23 + $0x18] sm:$0xff]  ;;  %v1952_v58 = vld [vmem:[%s3412_s23 + $0x10] sm:$0xff] }
 0x287   : > { %1385 = vrot.lane.b32.xlu0 %v1338_v9, %s3321_s17  ;;  %1383 = vrot.lane.b32.xlu1 %v1337_v19, %s3321_s17  ;;  %v1957_v9 = vld [vmem:[%s3412_s23 + $0x38] sm:$0xff]  ;;  %v1956_v19 = vld [vmem:[%s3412_s23 + $0x30] sm:$0xff] }
 0x28b   : > { %1973 = vperm.xlu0 %3120, %v1951_v35   ;;  %1968 = vperm.xlu1 %3109, %v1950_v45   ;;  %v1959_v35 = vld [vmem:[%s3412_s23 + $0x48] sm:$0xff]  ;;  %v1958_v45 = vld [vmem:[%s3412_s23 + $0x40] sm:$0xff] }
 0x28f   : > { %1983 = vperm.xlu0 %3120, %v1953_v3   ;;  %1978 = vperm.xlu1 %3109, %v1952_v58   ;;  %v1963_v3 = vld [vmem:[%s3412_s23 + $0x68] sm:$0xff]  ;;  %v1962_v58 = vld [vmem:[%s3412_s23 + $0x60] sm:$0xff] }
 0x293   : > { %1993 = vperm.xlu0 %3120, %v1955_v39   ;;  %1988 = vperm.xlu1 %3109, %v1954_v1   ;;  %v1965_v39 = vld [vmem:[%s3412_s23 + $0x78] sm:$0xff]  ;;  %v1964_v1 = vld [vmem:[%s3412_s23 + $0x70] sm:$0xff] }
 0x297   : > { %2003 = vperm.xlu0 %3120, %v1957_v9   ;;  %1998 = vperm.xlu1 %3109, %v1956_v19   ;;  %v3835_v9 = vpop.permute.xlu0 %3122  ;;  %v3837_v19 = vpop.permute.xlu1 %3127 }
 0x29b   : > { %2013 = vperm.xlu0 %3120, %v1959_v35   ;;  %2008 = vperm.xlu1 %3109, %v1958_v45  }
 0x29f   : > { %2023 = vperm.xlu0 %3120, %v1961_v0   ;;  %2018 = vperm.xlu1 %3109, %v1960_v51   ;;  %v3839_v0 = vpop.permute.xlu0 %3132  ;;  %v3841_v51 = vpop.permute.xlu1 %3137 }
 0x2a3   : > { %2033 = vperm.xlu0 %3120, %v1963_v3   ;;  %2028 = vperm.xlu1 %3109, %v1962_v58   ;;  %v3843_v35 = vpop.permute.xlu0 %3142  ;;  %v3845_v45 = vpop.permute.xlu1 %3147  ;;  %v4563_v3 = vunpack.i.h.bf16 %v3828_v46 }
 0x2a7   : > { %2043 = vperm.xlu0 %3120, %v1965_v39   ;;  %2038 = vperm.xlu1 %3109, %v1964_v1   ;;  %v4562_v39 = vunpack.i.l.bf16 %v3828_v46  ;;  %v1084_v1 = vmul.f32 %v4563_v3, %v3598_v18  ;;  %v4565_v18 = vunpack.i.l.bf16 %v3832_v28 }
 0x2ab   : > { %3152 = vset.pattern.permute.xlu1 %v4551_v37  ;;  %v1083_v37 = vmul.f32 %v4562_v39, %v3606_v21  ;;  %v4567_v39 = vunpack.i.h.bf16 %v3835_v9 }
 0x2bd   : > { %v1358_v58 = vpop.permute.xlu0 %1357  ;;  %v1198_v5 = vpop.permute.xlu1 %1197 }
 0x2be   : > { %v1244_v12 = vadd.f32 %v1198_v5, %v1084_v1  ;;  %v1085_v5 = vmul.f32 %v4565_v18, %v3624_v29  ;;  %v1088_v29 = vmul.f32 %v4567_v39, %v3632_v33  ;;  %v4578_v33 = vunpack.i.h.bf16 %v3837_v19 }
 0x2c0   : > { %v3857_v60 = vadd.f32 %v1358_v58, %v1244_v12  ;;  %v4566_v12 = vunpack.i.l.bf16 %v3835_v9 }
 0x2c1   : > { %v1356_v34 = vpop.permute.xlu0 %1355  ;;  %v1196_v11 = vpop.permute.xlu1 %1195 }
 0x2c2   : > { %v1243_v61 = vadd.f32 %v1196_v11, %v1083_v37  ;;  %v1086_v37 = vmul.f32 %v4568_v49, %v3616_v26  ;;  %v1087_v3 = vmul.f32 %v4566_v12, %v3640_v36  ;;  %v4577_v12 = vunpack.i.h.bf16 %v3839_v0 }
 0x2c4   : > { %v3855_v4 = vadd.f32 %v1356_v34, %v1243_v61 }
 0x2c5   : > { %v1362_v40 = vpop.permute.xlu1 %1361  ;;  %v1202_v42 = vpop.permute.xlu0 %1201 }
 0x2c6   : > { %2882 = vmatprep.mubr.msk.f32.mxu0 %vm502_vm1, %v3855_v4  ;;  %v1246_v11 = vadd.f32 %v1202_v42, %v1086_v37 }
 0x2c7   : > { %2883 = vmatmul.mubr.msk.f32.vlgmr.msra.gmra.mrb[10].mxu0 %vm502_vm1, %v3857_v60 }
 0x2c8   : > { %v3878_v26 = vadd.f32 %v1362_v40, %v1246_v11 }
 0x2c9   : > { %v1200_v21 = vpop.permute.xlu1 %1199  ;;  %v1366_v61 = vpop.permute.xlu0 %1365 }
 0x2ca   : > { %v1245_v34 = vadd.f32 %v1200_v21, %v1085_v5 }
 0x2cd   : > { %v1360_v58 = vpop.permute.xlu1 %1359  ;;  %v1204_v1 = vpop.permute.xlu0 %1203 }
 0x2ce   : > { %v3876_v55 = vadd.f32 %v1360_v58, %v1245_v34  ;;  %v1247_v42 = vadd.f32 %v1204_v1, %v1087_v3  ;;  %v4569_v3 = vunpack.i.l.bf16 %v3837_v19  ;;  %v1090_v34 = vmul.f32 %v4578_v33, %v3646_v44 }
 0x2d0   : > { %2885 = vmatprep.mubr.msk.f32.mxu0 %vm502_vm1, %v3876_v55 }
 0x2d1   : > { %2886 = vmatmul.mubr.msk.f32.gmra.mrb[12].mxu0 %vm502_vm1, %v3878_v26  ;;  %v1206_v37 = vpop.permute.xlu1 %1205  ;;  %v1364_v21 = vpop.permute.xlu0 %1363 }
 0x2d2   : > { %v1248_v5 = vadd.f32 %v1206_v37, %v1088_v29  ;;  %v3887_v18 = vadd.f32 %v1364_v21, %v1247_v42  ;;  %v4570_v42 = vunpack.i.l.bf16 %v3839_v0 }
 0x2d4   : > { %v3889_v36 = vadd.f32 %v1366_v61, %v1248_v5  ;;  %2888 = vmatprep.mubr.msk.f32.mxu0 %vm502_vm1, %v3887_v18  ;;  %v1089_v61 = vmul.f32 %v4569_v3, %v3654_v47  ;;  %v1091_v39 = vmul.f32 %v4570_v42, %v3668_v53  ;;  %v1092_v47 = vmul.f32 %v4577_v12, %v3660_v50 }
 0x2d5   : > { %v1370_v40 = vpop.permute.xlu1 %1369  ;;  %v1210_v11 = vpop.permute.xlu0 %1209  ;;  %v4572_v53 = vunpack.i.h.bf16 %v3841_v51  ;;  %v4573_v42 = vunpack.i.l.bf16 %v3843_v35 }
 0x2d6   : > { %2889 = vmatmul.mubr.msk.f32.gmra.mrb[14].mxu0 %vm502_vm1, %v3889_v36  ;;  %v1250_v29 = vadd.f32 %v1210_v11, %v1090_v34 }
 0x2d8   : > { %v3910_v44 = vadd.f32 %v1370_v40, %v1250_v29  ;;  %v4571_v40 = vunpack.i.l.bf16 %v3841_v51 }
 0x2d9   : > { %v1208_v58 = vpop.permute.xlu1 %1207  ;;  %v1374_v1 = vpop.permute.xlu0 %1373 }
 0x2da   : > { %v1249_v37 = vadd.f32 %v1208_v58, %v1089_v61  ;;  %4600 = vst [vmem:[#allocation7_spill] sm:$0xff] %v3910_v44 }
 0x2dd   : > { %v1368_v21 = vpop.permute.xlu1 %1367  ;;  %v1212_v5 = vpop.permute.xlu0 %1211 }
 0x2de   : > { %v3908_v49 = vadd.f32 %v1368_v21, %v1249_v37  ;;  %v1251_v11 = vadd.f32 %v1212_v5, %v1091_v39  ;;  %v1094_v37 = vmul.f32 %v4572_v53, %v3678_v56  ;;  %v1093_v21 = vmul.f32 %v4571_v40, %v3686_v59 }
 0x2df   : > { %v4575_v40 = vunpack.i.h.bf16 %v3845_v45  ;;  %v4574_v53 = vunpack.i.l.bf16 %v3845_v45 }
 0x2e0   : > { %4599 = vst [vmem:[#allocation6_spill] sm:$0xff] %v3908_v49  ;;  %2891 = vmatprep.mubr.msk.f32.mxu0 %vm502_vm1, %v3908_v49 }
 0x2e1   : > { %2892 = vmatmul.mubr.msk.f32.gmra.mrb[16].mxu0 %vm502_vm1, %v3910_v44  ;;  %v1214_v34 = vpop.permute.xlu1 %1213  ;;  %v1372_v58 = vpop.permute.xlu0 %1371 }
 0x2e2   : > { %v1252_v61 = vadd.f32 %v1214_v34, %v1092_v47  ;;  %v3919_v3 = vadd.f32 %v1372_v58, %v1251_v11 }
 0x2e4   : > { %4601 = vst [vmem:[#allocation8_spill] sm:$0xff] %v3919_v3  ;;  %v3923_v29 = vadd.f32 %v1374_v1, %v1252_v61  ;;  %2894 = vmatprep.mubr.msk.f32.mxu0 %vm502_vm1, %v3919_v3  ;;  %v4576_v61 = vunpack.i.h.bf16 %v3843_v35 }
 0x2e5   : > { %v1218_v50 = vpop.permute.xlu0 %1217  ;;  %v1216_v39 = vpop.permute.xlu1 %1215 }
 0x2e6   : > { %4602 = vst [vmem:[#allocation9_spill] sm:$0xff] %v3923_v29  ;;  %2895 = vmatmul.mubr.msk.f32.gmra.mrb[18].mxu0 %vm502_vm1, %v3923_v29  ;;  %v1254_v5 = vadd.f32 %v1218_v50, %v1094_v37  ;;  %v1253_v47 = vadd.f32 %v1216_v39, %v1093_v21  ;;  %v1096_v50 = vmul.f32 %v4576_v61, %v3694_v63 }
 0x2e7   : > { %v1095_v39 = vmul.f32 %v4573_v42, %v3702_v2 }
 0x2e9   : > { %v1378_v1 = vpop.permute.xlu0 %1377  ;;  %v1376_v11 = vpop.permute.xlu1 %1375 }
 0x2ea   : > { %v3935_v34 = vadd.f32 %v1378_v1, %v1254_v5  ;;  %v3937_v58 = vadd.f32 %v1376_v11, %v1253_v47 }
 0x2ec   : > { %4603 = vst [vmem:[#allocation10_spill] sm:$0xff] %v3935_v34  ;;  %4604 = vst [vmem:[#allocation11_spill] sm:$0xff] %v3937_v58  ;;  %2897 = vmatprep.mubr.msk.f32.mxu0 %vm502_vm1, %v3937_v58 }
 0x2ed   : > { %2898 = vmatmul.mubr.msk.f32.gmra.mrb[20].mxu0 %vm502_vm1, %v3935_v34  ;;  %v1222_v56 = vpop.permute.xlu0 %1221  ;;  %v1220_v59 = vpop.permute.xlu1 %1219 }
 0x2ee   : > { %v1256_v37 = vadd.f32 %v1222_v56, %v1096_v50  ;;  %v1255_v21 = vadd.f32 %v1220_v59, %v1095_v39  ;;  %v1097_v56 = vmul.f32 %v4574_v53, %v3718_v10  ;;  %v1098_v59 = vmul.f32 %v4575_v40, %v3710_v7 }
 0x2ef   : > { %v4634_v40 = vunpack.i.l.bf16 %v3828_v46 }
 0x2f1   : > { %v1382_v5 = vpop.permute.xlu0 %1381  ;;  %v1380_v47 = vpop.permute.xlu1 %1379 }
 0x2f2   : > { %v3951_v1 = vadd.f32 %v1382_v5, %v1256_v37  ;;  %v3953_v11 = vadd.f32 %v1380_v47, %v1255_v21 }
 0x2f4   : > { %4605 = vst [vmem:[#allocation12_spill] sm:$0xff] %v3951_v1  ;;  %4606 = vst [vmem:[#allocation13_spill] sm:$0xff] %v3953_v11  ;;  %2900 = vmatprep.mubr.msk.f32.mxu0 %vm502_vm1, %v3953_v11 }
 0x2f5   : > { %2901 = vmatmul.mubr.msk.f32.gmra.mrb[22].mxu0 %vm502_vm1, %v3951_v1  ;;  %v1226_v63 = vpop.permute.xlu0 %1225  ;;  %v1224_v2 = vpop.permute.xlu1 %1223 }
 0x2f6   : > { %v1258_v50 = vadd.f32 %v1226_v63, %v1098_v59  ;;  %v1257_v39 = vadd.f32 %v1224_v2, %v1097_v56 }
 0x2f9   : > { %v1386_v37 = vpop.permute.xlu0 %1385  ;;  %v1384_v21 = vpop.permute.xlu1 %1383 }
 0x2fa   : > { %v3967_v5 = vadd.f32 %v1386_v37, %v1258_v50  ;;  %v3969_v47 = vadd.f32 %v1384_v21, %v1257_v39  ;;  %v4610_v50 = vunpack.i.l.bf16 %v3608_v22  ;;  %v4612_v39 = vunpack.i.l.bf16 %v3630_v32 }
 0x2fb   : > { %v4613_v22 = vunpack.i.h.bf16 %v3670_v54  ;;  %v4615_v32 = vunpack.i.h.bf16 %v3676_v43 }
 0x2fc   : > { %4607 = vst [vmem:[#allocation14_spill] sm:$0xff] %v3967_v5  ;;  %4608 = vst [vmem:[#allocation15_spill] sm:$0xff] %v3969_v47  ;;  %2903 = vmatprep.mubr.msk.f32.mxu0 %vm502_vm1, %v3969_v47 }
 0x2fd   : > { %2904 = vmatmul.mubr.msk.f32.gmra.mrb[24].mxu0 %vm502_vm1, %v3967_v5 }
 0x39a   : > { %v3975_v42 = vpop.f32.mrb[10].mxu0 }
 0x39b   : > { %v1631_v7 = vmul.f32 %v3022_v17, %v3975_v42  ;;  %v3980_v10 = vpop.f32.mrb[11].mxu0  ;;  %v1727_v2 = vmul.f32 %v3028_v16, %v3975_v42 }
 0x39c   : > { %v1630_v63 = vmul.f32 %v3021_v24, %v3980_v10  ;;  %v1726_v56 = vmul.f32 %v3027_v23, %v3980_v10  ;;  %v1614_v61 = vmul.f32 %v4634_v40, %v3980_v10 }
 0x39d   : > { %1664 = vrot.lane.b32.xlu0 %v1631_v7, %s3323_s19 }
 0x39e   : > { %1662 = vrot.lane.b32.xlu1 %v1630_v63, %s3323_s19 }
 0x3a1   : > { %1760 = vrot.lane.b32.xlu0 %v1727_v2, %s3324_s20  ;;  %v4614_v2 = vunpack.i.l.bf16 %v3670_v54  ;;  %v4617_v54 = vunpack.i.h.bf16 %v3708_v6 }
 0x3a2   : > { %1758 = vrot.lane.b32.xlu1 %v1726_v56, %s3324_s20 }
 0x3a4   : > { %v3995_v14 = vpop.f32.mrb[12].mxu0 }
 0x3a5   : > { %v1633_v17 = vmul.f32 %v3034_v30, %v3995_v14  ;;  %v4000_v24 = vpop.f32.mrb[13].mxu0  ;;  %v1729_v13 = vmul.f32 %v3040_v31, %v3995_v14 }
 0x3a6   : > { %v1632_v16 = vmul.f32 %v3033_v41, %v4000_v24  ;;  %v1728_v30 = vmul.f32 %v3039_v48, %v4000_v24 }
 0x3a7   : > { %1668 = vrot.lane.b32.xlu0 %v1633_v17, %s3323_s19 }
 0x3a8   : > { %1666 = vrot.lane.b32.xlu1 %v1632_v16, %s3323_s19 }
 0x3a9   : > { %v4010_v23 = vpop.f32.mrb[14].mxu0 }
 0x3aa   : > { %v4015_v59 = vpop.f32.mrb[15].mxu0  ;;  %v1635_v41 = vmul.f32 %v4609_v15, %v4010_v23  ;;  %v1731_v48 = vmul.f32 %v4611_v25, %v4010_v23 }
 0x3ab   : > { %1764 = vrot.lane.b32.xlu0 %v1729_v13, %s3324_s20  ;;  %v1634_v31 = vmul.f32 %v4610_v50, %v4015_v59  ;;  %v1730_v37 = vmul.f32 %v4612_v39, %v4015_v59  ;;  %v4616_v13 = vunpack.i.l.bf16 %v3676_v43  ;;  %v4618_v50 = vunpack.i.l.bf16 %v3708_v6 }
 0x3ac   : > { %1762 = vrot.lane.b32.xlu1 %v1728_v30, %s3324_s20  ;;  %v4619_v43 = vunpack.i.h.bf16 %v3692_v62  ;;  %v4621_v6 = vunpack.i.h.bf16 %v3730_v27 }
 0x3af   : > { %1672 = vrot.lane.b32.xlu0 %v1635_v41, %s3323_s19 }
 0x3b0   : > { %1670 = vrot.lane.b32.xlu1 %v1634_v31, %s3323_s19 }
 0x3b3   : > { %1768 = vrot.lane.b32.xlu0 %v1731_v48, %s3324_s20 }
 0x3b4   : > { %v4034_v21 = vpop.f32.mrb[16].mxu0  ;;  %1766 = vrot.lane.b32.xlu1 %v1730_v37, %s3324_s20  ;;  %v4620_v37 = vunpack.i.l.bf16 %v3692_v62  ;;  %v4623_v62 = vunpack.i.h.bf16 %v3746_v52 }
 0x3b5   : > { %v1637_v7 = vmul.f32 %v4613_v22, %v4034_v21  ;;  %v4040_v63 = vpop.f32.mrb[17].mxu0  ;;  %v1733_v17 = vmul.f32 %v4615_v32, %v4034_v21 }
 0x3b6   : > { %v1636_v56 = vmul.f32 %v4614_v2, %v4040_v63  ;;  %v1732_v30 = vmul.f32 %v4616_v13, %v4040_v63  ;;  %v4622_v2 = vunpack.i.l.bf16 %v3730_v27  ;;  %v4625_v27 = vunpack.i.h.bf16 %v3758_v8 }
 0x3b7   : > { %1676 = vrot.lane.b32.xlu0 %v1637_v7, %s3323_s19 }
 0x3b8   : > { %1674 = vrot.lane.b32.xlu1 %v1636_v56, %s3323_s19 }
 0x3b9   : > { %v4050_v16 = vpop.f32.mrb[18].mxu0 }
 0x3ba   : > { %v4055_v15 = vpop.f32.mrb[19].mxu0  ;;  %v1639_v41 = vmul.f32 %v4617_v54, %v4050_v16  ;;  %v1735_v48 = vmul.f32 %v4619_v43, %v4050_v16 }
 0x3bb   : > { %1772 = vrot.lane.b32.xlu0 %v1733_v17, %s3324_s20  ;;  %v1638_v31 = vmul.f32 %v4618_v50, %v4055_v15  ;;  %v1734_v22 = vmul.f32 %v4620_v37, %v4055_v15  ;;  %v4626_v50 = vunpack.i.l.bf16 %v3758_v8  ;;  %v4629_v8 = vunpack.i.h.bf16 %v3782_v38 }
 0x3bc   : > { %1770 = vrot.lane.b32.xlu1 %v1732_v30, %s3324_s20  ;;  %v4624_v30 = vunpack.i.l.bf16 %v3746_v52  ;;  %v4627_v52 = vunpack.i.h.bf16 %v3766_v20 }
 0x3bf   : > { %1680 = vrot.lane.b32.xlu0 %v1639_v41, %s3323_s19 }
 0x3c0   : > { %v4066_v25 = vpop.f32.mrb[20].mxu0  ;;  %1678 = vrot.lane.b32.xlu1 %v1638_v31, %s3323_s19 }
 0x3c1   : > { %v4072_v39 = vpop.f32.mrb[21].mxu0  ;;  %v1641_v7 = vmul.f32 %v4621_v6, %v4066_v25  ;;  %v1737_v17 = vmul.f32 %v4623_v62, %v4066_v25 }
 0x3c2   : > { %v1640_v56 = vmul.f32 %v4622_v2, %v4072_v39  ;;  %v1736_v54 = vmul.f32 %v4624_v30, %v4072_v39  ;;  %v4630_v2 = vunpack.i.l.bf16 %v3782_v38  ;;  %v4137_v38 = vpop.permute.xlu1 %1968 }
 0x3c3   : > { %1776 = vrot.lane.b32.xlu0 %v1735_v48, %s3324_s20 }
 0x3c4   : > { %1774 = vrot.lane.b32.xlu1 %v1734_v22, %s3324_s20  ;;  %v4628_v22 = vunpack.i.l.bf16 %v3766_v20  ;;  %v4631_v20 = vunpack.i.h.bf16 %v3794_v57 }
 0x3c7   : > { %1684 = vrot.lane.b32.xlu0 %v1641_v7, %s3323_s19 }
 0x3c8   : > { %v4086_v32 = vpop.f32.mrb[22].mxu0  ;;  %1682 = vrot.lane.b32.xlu1 %v1640_v56, %s3323_s19 }
 0x3c9   : > { %v4092_v13 = vpop.f32.mrb[23].mxu0  ;;  %v1643_v41 = vmul.f32 %v4625_v27, %v4086_v32  ;;  %v1739_v48 = vmul.f32 %v4627_v52, %v4086_v32 }
 0x3ca   : > { %v1642_v31 = vmul.f32 %v4626_v50, %v4092_v13  ;;  %v1738_v6 = vmul.f32 %v4628_v22, %v4092_v13 }
 0x3cb   : > { %1780 = vrot.lane.b32.xlu0 %v1737_v17, %s3324_s20  ;;  %v4632_v17 = vunpack.i.l.bf16 %v3794_v57 }
 0x3cc   : > { %1778 = vrot.lane.b32.xlu1 %v1736_v54, %s3324_s20  ;;  %v4135_v54 = vpop.permute.xlu0 %1973 }
 0x3cf   : > { %1688 = vrot.lane.b32.xlu0 %v1643_v41, %s3323_s19  ;;  %v4141_v41 = vpop.permute.xlu1 %1978 }
 0x3d0   : > { %1686 = vrot.lane.b32.xlu1 %v1642_v31, %s3323_s19  ;;  %v4107_v43 = vpop.f32.mrb[24].mxu0  ;;  %v4139_v27 = vpop.permute.xlu0 %1983 }
 0x3d1   : > { %v4112_v37 = vpop.f32.mrb[25].mxu0  ;;  %v1645_v7 = vmul.f32 %v4629_v8, %v4107_v43  ;;  %v1741_v62 = vmul.f32 %v4631_v20, %v4107_v43 }
 0x3d2   : > { %v1644_v56 = vmul.f32 %v4630_v2, %v4112_v37  ;;  %v1740_v30 = vmul.f32 %v4632_v17, %v4112_v37  ;;  %v4633_v17 = vunpack.i.h.bf16 %v3828_v46 }
 0x3d3   : > { %1784 = vrot.lane.b32.xlu0 %v1739_v48, %s3324_s20  ;;  %v4145_v31 = vpop.permute.xlu1 %1988 }
 0x3d4   : > { %1782 = vrot.lane.b32.xlu1 %v1738_v6, %s3324_s20  ;;  %v4143_v50 = vpop.permute.xlu0 %1993 }
 0x3d7   : > { %1692 = vrot.lane.b32.xlu0 %v1645_v7, %s3323_s19  ;;  %v4149_v57 = vpop.permute.xlu1 %1998 }
 0x3d8   : > { %1690 = vrot.lane.b32.xlu1 %v1644_v56, %s3323_s19  ;;  %v4147_v52 = vpop.permute.xlu0 %2003 }
 0x3db   : > { %1788 = vrot.lane.b32.xlu0 %v1741_v62, %s3324_s20  ;;  %v4153_v22 = vpop.permute.xlu1 %2008 }
 0x3dc   : > { %1786 = vrot.lane.b32.xlu1 %v1740_v30, %s3324_s20  ;;  %v4151_v48 = vpop.permute.xlu0 %2013  ;;  %v1615_v30 = vmul.f32 %v4633_v17, %v3975_v42  ;;  %v4635_v17 = vunpack.i.h.bf16 %v3832_v28 }
 0x3de   : > { %v1617_v46 = vmul.f32 %v4635_v17, %v3995_v14 }
 0x3df   : > { %v4157_v8 = vpop.permute.xlu1 %2018 }
 0x3e0   : > { %v4155_v6 = vpop.permute.xlu0 %2023 }
 0x3e3   : > { %v4161_v2 = vpop.permute.xlu1 %2028 }
 0x3e4   : > { %v4159_v7 = vpop.permute.xlu0 %2033 }
 0x3e7   : > { %v4165_v20 = vpop.permute.xlu1 %2038 }
 0x3e8   : > { %v4163_v56 = vpop.permute.xlu0 %2043 }
 0x40f   : > { %v1665_v62 = vpop.permute.xlu0 %1664 }
 0x410   : > { %v1663_v53 = vpop.permute.xlu1 %1662  ;;  %v1711_v12 = vadd.f32 %v1665_v62, %v1615_v30 }
 0x411   : > { %v1710_v33 = vadd.f32 %v1663_v53, %v1614_v61  ;;  %v4636_v53 = vunpack.i.l.bf16 %v3832_v28  ;;  %v4637_v28 = vunpack.i.h.bf16 %v3835_v9 }
 0x413   : > { %v1761_v47 = vpop.permute.xlu0 %1760 }
 0x414   : > { %v1807_v5 = vadd.f32 %v1761_v47, %v1711_v12  ;;  %v1759_v11 = vpop.permute.xlu1 %1758  ;;  %v1616_v12 = vmul.f32 %v4636_v53, %v4000_v24  ;;  %v1619_v24 = vmul.f32 %v4637_v28, %v4010_v23 }
 0x415   : > { %v1806_v1 = vadd.f32 %v1759_v11, %v1710_v33 }
 0x416   : > { %vm1823_vm4 = vcmp.gt.f32.partialorder %v1807_v5, 0.0  ;;  %v1839_v58 = vmul.f32 0.2, %v1807_v5 }
 0x417   : > { %vm1822_vm5 = vcmp.gt.f32.partialorder %v1806_v1, 0.0  ;;  %v1838_v34 = vmul.f32 0.2, %v1806_v1 }
 0x418   : > { %v1855_v3 = vsel %vm1823_vm4, %v1807_v5, %v1839_v58 }
 0x419   : > { %v1871_v29 = vsub.f32 0.0, %v1855_v3  ;;  %v1854_v49 = vsel %vm1822_vm5, %v1806_v1, %v1838_v34  ;;  %v1669_v44 = vpop.permute.xlu0 %1668  ;;  %vm2398_vm5 = vcmask 31744  }
 0x41a   : > { %v1870_v42 = vsub.f32 0.0, %v1854_v49  ;;  %v1667_v40 = vpop.permute.xlu1 %1666  ;;  %v1713_v33 = vadd.f32 %v1669_v44, %v1617_v46  ;;  %v4638_v44 = vunpack.i.l.bf16 %v3835_v9 }
 0x41b   : > { %v1888_v61 = vmul.f32 1.442695, %v1871_v29  ;;  %v1712_v47 = vadd.f32 %v1667_v40, %v1616_v12 }
 0x41c   : > { %v1886_v11 = vmul.f32 1.442695, %v1870_v42  ;;  %v1618_v62 = vmul.f32 %v4638_v44, %v4015_v59  ;;  %v4639_v59 = vunpack.i.h.bf16 %v3837_v19 }
 0x41d   : > { %3210 = vpow2.f32 %v1888_v61  ;;  %v1765_v10 = vpop.permute.xlu0 %1764 }
 0x41e   : > { %v1809_v58 = vadd.f32 %v1765_v10, %v1713_v33  ;;  %v1763_v3 = vpop.permute.xlu1 %1762  ;;  %3212 = vpow2.f32 %v1886_v11 }
 0x41f   : > { %v1808_v34 = vadd.f32 %v1763_v3, %v1712_v47 }
 0x420   : > { %vm1825_vm6 = vcmp.gt.f32.partialorder %v1809_v58, 0.0  ;;  %v1841_v49 = vmul.f32 0.2, %v1809_v58 }
 0x421   : > { %v1840_v1 = vmul.f32 0.2, %v1808_v34  ;;  %v1673_v5 = vpop.permute.xlu0 %1672  ;;  %vm1824_vm7 = vcmp.gt.f32.partialorder %v1808_v34, 0.0 }
 0x422   : > { %v1857_v14 = vsel %vm1825_vm6, %v1809_v58, %v1841_v49  ;;  %v1671_v29 = vpop.permute.xlu1 %1670  ;;  %v1715_v42 = vadd.f32 %v1673_v5, %v1619_v24  ;;  %v1621_v49 = vmul.f32 %v4639_v59, %v4034_v21  ;;  %v4640_v5 = vunpack.i.l.bf16 %v3837_v19 }
 0x423   : > { %v1873_v30 = vsub.f32 0.0, %v1857_v14  ;;  %v1856_v46 = vsel %vm1824_vm7, %v1808_v34, %v1840_v1  ;;  %v1714_v40 = vadd.f32 %v1671_v29, %v1618_v62  ;;  %vm2415_vm6 = vcmask 64512  }
 0x424   : > { %v1872_v10 = vsub.f32 0.0, %v1856_v46  ;;  %v1620_v14 = vmul.f32 %v4640_v5, %v4040_v63  ;;  %vm2432_vm7 = vcmask 97280  }
 0x425   : > { %v1892_v17 = vmul.f32 1.442695, %v1873_v30  ;;  %v1769_v53 = vpop.permute.xlu0 %1768 }
 0x426   : > { %v1811_v12 = vadd.f32 %v1769_v53, %v1715_v42  ;;  %v1767_v61 = vpop.permute.xlu1 %1766  ;;  %v1890_v28 = vmul.f32 1.442695, %v1872_v10 }
 0x427   : > { %v3211_v33 = vpop.eup %3210  ;;  %3214 = vpow2.f32 %v1892_v17  ;;  %v1810_v11 = vadd.f32 %v1767_v61, %v1714_v40 }
 0x428   : > { %v1919_v47 = vadd.f32 1.0, %v3211_v33  ;;  %vm1827_vm8 = vcmp.gt.f32.partialorder %v1811_v12, 0.0  ;;  %v1843_v23 = vmul.f32 0.2, %v1811_v12  ;;  %v3213_v1 = vpop.eup %3212 }
 0x429   : > { %v1677_v58 = vpop.permute.xlu0 %1676  ;;  %v1842_v9 = vmul.f32 0.2, %v1810_v11  ;;  %vm1826_vm9 = vcmp.gt.f32.partialorder %v1810_v11, 0.0  ;;  %v1918_v30 = vadd.f32 1.0, %v3213_v1 }
 0x42a   : > { %3216 = vrcp.f32 %v1919_v47  ;;  %v1859_v3 = vsel %vm1827_vm8, %v1811_v12, %v1843_v23  ;;  %v1675_v34 = vpop.permute.xlu1 %1674  ;;  %v1717_v29 = vadd.f32 %v1677_v58, %v1621_v49 }
 0x42b   : > { %v1875_v24 = vsub.f32 0.0, %v1859_v3  ;;  %v1716_v44 = vadd.f32 %v1675_v34, %v1620_v14  ;;  %v1858_v42 = vsel %vm1826_vm9, %v1810_v11, %v1842_v9  ;;  %3218 = vpow2.f32 %v1890_v28 }
 0x42c   : > { %v1874_v61 = vsub.f32 0.0, %v1858_v42  ;;  %3220 = vrcp.f32 %v1918_v30  ;;  %v4641_v3 = vunpack.i.h.bf16 %v3839_v0  ;;  %v3325_v30 = vmov 3  }
 0x42d   : > { %v1773_v62 = vpop.permute.xlu0 %1772  ;;  %v1896_v53 = vmul.f32 1.442695, %v1875_v24 }
 0x42e   : > { %v1813_v17 = vadd.f32 %v1773_v62, %v1717_v29  ;;  %v1771_v46 = vpop.permute.xlu1 %1770  ;;  %v1894_v58 = vmul.f32 1.442695, %v1874_v61  ;;  %v1623_v9 = vmul.f32 %v4641_v3, %v4050_v16  ;;  %v4642_v62 = vmov 1  }
 0x42f   : > { %v1812_v40 = vadd.f32 %v1771_v46, %v1716_v44  ;;  %3222 = vpow2.f32 %v1896_v53  ;;  %v4644_v61 = vmov 0  }
 0x430   : > { %vm1829_vm10 = vcmp.gt.f32.partialorder %v1813_v17, 0.0  ;;  %v1845_v21 = vmul.f32 0.2, %v1813_v17 }
 0x431   : > { %v3215_v12 = vpop.eup %3214  ;;  %v1681_v33 = vpop.permute.xlu0 %1680  ;;  %v1844_v47 = vmul.f32 0.2, %v1812_v40  ;;  %vm1828_vm11 = vcmp.gt.f32.partialorder %v1812_v40, 0.0 }
 0x432   : > { %v1861_v19 = vsel %vm1829_vm10, %v1813_v17, %v1845_v21  ;;  %v1921_v63 = vadd.f32 1.0, %v3215_v12  ;;  %v1679_v23 = vpop.permute.xlu1 %1678  ;;  %v1719_v1 = vadd.f32 %v1681_v33, %v1623_v9 }
 0x433   : > { %v1877_v11 = vsub.f32 0.0, %v1861_v19  ;;  %v1860_v34 = vsel %vm1828_vm11, %v1812_v40, %v1844_v47  ;;  %v4643_v40 = vunpack.i.l.bf16 %v3839_v0  ;;  %v4645_v0 = vunpack.i.h.bf16 %v3841_v51 }
 0x434   : > { %v3217_v10 = vpop.eup %3216  ;;  %3224 = vrcp.f32 %v1921_v63  ;;  %v1876_v24 = vsub.f32 0.0, %v1860_v34 }
 0x435   : > { %v1777_v59 = vpop.permute.xlu0 %1776  ;;  %v2047_v49 = vmul.f32 %v3217_v10, %v4135_v54  ;;  %3226 = vpow2.f32 %v1894_v58  ;;  %v1900_v5 = vmul.f32 1.442695, %v1877_v11  ;;  %v3219_v28 = vpop.eup %3218  ;;  %v1622_v53 = vmul.f32 %v4643_v40, %v4055_v15 }
 0x436   : > { %v1815_v14 = vadd.f32 %v1777_v59, %v1719_v1  ;;  %v1775_v29 = vpop.permute.xlu1 %1774  ;;  %v3221_v16 = vpop.eup %3220  ;;  %v1920_v54 = vadd.f32 1.0, %v3219_v28  ;;  %v1898_v46 = vmul.f32 1.442695, %v1876_v24  ;;  %v1625_v15 = vmul.f32 %v4645_v0, %v4066_v25 }
 0x437   : > { %2069 = vperm.xlu0 %3120, %v2047_v49   ;;  %2243 = vperm.xlu1 %3152, %v2047_v49   ;;  %3228 = vpow2.f32 %v1900_v5  ;;  %v2046_v21 = vmul.f32 %v3221_v16, %v4137_v38  ;;  %v1718_v63 = vadd.f32 %v1679_v23, %v1622_v53  ;;  %v4646_v25 = vunpack.i.l.bf16 %v3841_v51 }
 0x438   : > { %v1847_v42 = vmul.f32 0.2, %v1815_v14  ;;  %vm1831_vm12 = vcmp.gt.f32.partialorder %v1815_v14, 0.0  ;;  %3230 = vrcp.f32 %v1920_v54  ;;  %v4648_v51 = vunpack.i.h.bf16 %v3843_v35 }
 0x439   : > { %v1685_v44 = vpop.permute.xlu0 %1684  ;;  %v3223_v17 = vpop.eup %3222  ;;  %3232 = vpow2.f32 %v1898_v46  ;;  %v1814_v11 = vadd.f32 %v1775_v29, %v1718_v63  ;;  %v4647_v29 = vmov 2  }
 0x43a   : > { %v1683_v12 = vpop.permute.xlu1 %1682  ;;  %v1923_v19 = vadd.f32 1.0, %v3223_v17  ;;  %v1863_v47 = vsel %vm1831_vm12, %v1815_v14, %v1847_v42  ;;  %v1721_v9 = vadd.f32 %v1685_v44, %v1625_v15 }
 0x43b   : > { %3151 = vset.pattern.permute.xlu0 %v4642_v62  ;;  %3153 = vset.pattern.permute.xlu1 %v3325_v30  ;;  %v1879_v38 = vsub.f32 0.0, %v1863_v47  ;;  %v1846_v34 = vmul.f32 0.2, %v1814_v11  ;;  %vm1830_vm13 = vcmp.gt.f32.partialorder %v1814_v11, 0.0 }
 0x43c   : > { %2163 = vperm.xlu0 %3151, %v2047_v49   ;;  %2323 = vperm.xlu1 %3153, %v2047_v49   ;;  %3234 = vrcp.f32 %v1923_v19 }
 0x43d   : > { %v1781_v10 = vpop.permute.xlu0 %1780  ;;  %v1904_v14 = vmul.f32 1.442695, %v1879_v38  ;;  %v1862_v16 = vsel %vm1830_vm13, %v1814_v11, %v1846_v34 }
 0x43e   : > { %v3225_v33 = vpop.eup %3224  ;;  %v1779_v59 = vpop.permute.xlu1 %1778  ;;  %v1817_v1 = vadd.f32 %v1781_v10, %v1721_v9  ;;  %v1878_v53 = vsub.f32 0.0, %v1862_v16 }
 0x43f   : > { %v3227_v58 = vpop.eup %3226  ;;  %v2049_v3 = vmul.f32 %v3225_v33, %v4139_v27  ;;  %v1624_v27 = vmul.f32 %v4646_v25, %v4072_v39  ;;  %v1627_v39 = vmul.f32 %v4648_v51, %v4086_v32  ;;  %v4649_v32 = vunpack.i.l.bf16 %v3843_v35 }
 0x440   : > { %3157 = vset.pattern.permute.xlu0 %v3325_v30  ;;  %3154 = vset.pattern.permute.xlu1 %v4644_v61  ;;  %v1922_v23 = vadd.f32 1.0, %v3227_v58  ;;  %v1849_v54 = vmul.f32 0.2, %v1817_v1  ;;  %vm1833_vm14 = vcmp.gt.f32.partialorder %v1817_v1, 0.0  ;;  %v1902_v11 = vmul.f32 1.442695, %v1878_v53 }
 0x441   : > { %2319 = vperm.xlu0 %3157, %v2046_v21   ;;  %2064 = vperm.xlu1 %3154, %v2046_v21   ;;  %v3229_v49 = vpop.eup %3228  ;;  %v1689_v5 = vpop.permute.xlu0 %1688  ;;  %v1720_v24 = vadd.f32 %v1683_v12, %v1624_v27  ;;  %v1626_v58 = vmul.f32 %v4649_v32, %v4092_v13 }
 0x442   : > { %3236 = vrcp.f32 %v1922_v23  ;;  %v1925_v28 = vadd.f32 1.0, %v3229_v49  ;;  %v3231_v44 = vpop.eup %3230  ;;  %v1687_v46 = vpop.permute.xlu1 %1686  ;;  %v1723_v12 = vadd.f32 %v1689_v5, %v1627_v39  ;;  %v1865_v47 = vsel %vm1833_vm14, %v1817_v1, %v1849_v54 }
 0x443   : > { %v3233_v42 = vpop.eup %3232  ;;  %3238 = vpow2.f32 %v1904_v14  ;;  %v1816_v17 = vadd.f32 %v1779_v59, %v1720_v24  ;;  %v4218_v33 = vmul.f32 %v3231_v44, %v4141_v41  ;;  %v1881_v41 = vsub.f32 0.0, %v1865_v47 }
 0x444   : > { %3240 = vrcp.f32 %v1925_v28  ;;  %v1924_v63 = vadd.f32 1.0, %v3233_v42  ;;  %v1722_v38 = vadd.f32 %v1687_v46, %v1626_v58 }
 0x445   : > { %3158 = vset.pattern.permute.xlu0 %v4644_v61  ;;  %3155 = vset.pattern.permute.xlu1 %v4642_v62  ;;  %v1785_v40 = vpop.permute.xlu0 %1784  ;;  %vm1832_vm15 = vcmp.gt.f32.partialorder %v1816_v17, 0.0  ;;  %v1908_v13 = vmul.f32 1.442695, %v1881_v41 }
 0x446   : > { %2079 = vperm.xlu0 %3158, %v2049_v3   ;;  %2159 = vperm.xlu1 %3155, %v2046_v21   ;;  %v3235_v19 = vpop.eup %3234  ;;  %v1819_v10 = vadd.f32 %v1785_v40, %v1723_v12  ;;  %v1783_v0 = vpop.permute.xlu1 %1782  ;;  %3242 = vrcp.f32 %v1924_v63 }
 0x447   : > { %v4227_v15 = vmul.f32 %v3235_v19, %v4143_v50  ;;  %v1818_v49 = vadd.f32 %v1783_v0, %v1722_v38  ;;  %3244 = vpow2.f32 %v1902_v11 }
 0x448   : > { %v1851_v59 = vmul.f32 0.2, %v1819_v10  ;;  %vm1835_vm0 = vcmp.gt.f32.partialorder %v1819_v10, 0.0  ;;  %3246 = vpow2.f32 %v1908_v13 }
 0x449   : > { %v1693_v34 = vpop.permute.xlu0 %1692  ;;  %v1850_v27 = vmul.f32 0.2, %v1818_v49  ;;  %vm1834_vm2 = vcmp.gt.f32.partialorder %v1818_v49, 0.0 }
 0x44a   : > { %3161 = vset.pattern.permute.xlu0 %v3325_v30  ;;  %3156 = vset.pattern.permute.xlu1 %v4647_v29  ;;  %v1867_v14 = vsel %vm1835_vm0, %v1819_v10, %v1851_v59  ;;  %v1691_v44 = vpop.permute.xlu1 %1690 }
 0x44b   : > { %2331 = vperm.xlu0 %3161, %v2049_v3   ;;  %2239 = vperm.xlu1 %3156, %v2046_v21   ;;  %v1848_v21 = vmul.f32 0.2, %v1816_v17  ;;  %v1883_v28 = vsub.f32 0.0, %v1867_v14 }
 0x44c   : > { %v3237_v9 = vpop.eup %3236 }
 0x44d   : > { %v1864_v23 = vsel %vm1832_vm15, %v1816_v17, %v1848_v21  ;;  %v3239_v35 = vpop.eup %3238  ;;  %v4232_v50 = vmul.f32 %v3237_v9, %v4145_v31  ;;  %v4650_v31 = vunpack.i.h.bf16 %v3845_v45  ;;  %v1789_v54 = vpop.permute.xlu0 %1788  ;;  %v1866_v17 = vsel %vm1834_vm2, %v1818_v49, %v1850_v27 }
 0x44e   : > { %v1880_v1 = vsub.f32 0.0, %v1864_v23  ;;  %v3241_v5 = vpop.eup %3240  ;;  %v1927_v25 = vadd.f32 1.0, %v3239_v35  ;;  %v1912_v39 = vmul.f32 1.442695, %v1883_v28  ;;  %v1882_v53 = vsub.f32 0.0, %v1866_v17  ;;  %v1787_v19 = vpop.permute.xlu1 %1786 }
 0x44f   : > { %3164 = vset.pattern.permute.xlu0 %v4647_v29  ;;  %3159 = vset.pattern.permute.xlu1 %v4642_v62  ;;  %v1629_v24 = vmul.f32 %v4650_v31, %v4107_v43  ;;  %v4242_v16 = vmul.f32 %v3241_v5, %v4147_v52  ;;  %v4651_v43 = vunpack.i.l.bf16 %v3845_v45 }
 0x450   : > { %2247 = vperm.xlu0 %3164, %v4218_v33   ;;  %2171 = vperm.xlu1 %3159, %v2049_v3   ;;  %v3243_v42 = vpop.eup %3242  ;;  %3248 = vrcp.f32 %v1927_v25  ;;  %v1910_v32 = vmul.f32 1.442695, %v1882_v53 }
 0x451   : > { %v1725_v51 = vadd.f32 %v1693_v34, %v1629_v24  ;;  %v3245_v40 = vpop.eup %3244  ;;  %v1628_v52 = vmul.f32 %v4651_v43, %v4112_v37  ;;  %v4251_v12 = vmul.f32 %v3243_v42, %v4149_v57 }
 0x452   : > { %v1926_v47 = vadd.f32 1.0, %v3245_v40  ;;  %v3247_v10 = vpop.eup %3246 }
 0x453   : > { %v1821_v46 = vadd.f32 %v1789_v54, %v1725_v51  ;;  %v1724_v63 = vadd.f32 %v1691_v44, %v1628_v52  ;;  %v1929_v57 = vadd.f32 1.0, %v3247_v10 }
 0x454   : > { %2259 = vperm.xlu0 %3164, %v4227_v15   ;;  %3160 = vset.pattern.permute.xlu1 %v4647_v29 }
 0x455   : > { %2251 = vperm.xlu1 %3160, %v2049_v3   ;;  %v1906_v3 = vmul.f32 1.442695, %v1880_v1  ;;  %v1853_v21 = vmul.f32 0.2, %v1821_v46  ;;  %vm1837_vm3 = vcmp.gt.f32.partialorder %v1821_v46, 0.0  ;;  %v1820_v45 = vadd.f32 %v1787_v19, %v1724_v63 }
 0x457   : > { %3250 = vpow2.f32 %v1906_v3  ;;  %v1869_v58 = vsel %vm1837_vm3, %v1821_v46, %v1853_v21  ;;  %v1852_v11 = vmul.f32 0.2, %v1820_v45  ;;  %vm1836_vm4 = vcmp.gt.f32.partialorder %v1820_v45, 0.0 }
 0x458   : > { %3170 = vset.pattern.permute.xlu0 %v4642_v62  ;;  %3252 = vpow2.f32 %v1912_v39  ;;  %v1885_v0 = vsub.f32 0.0, %v1869_v58 }
 0x459   : > { %2175 = vperm.xlu0 %3170, %v4232_v50   ;;  %3162 = vset.pattern.permute.xlu1 %v4644_v61  ;;  %3254 = vrcp.f32 %v1926_v47  ;;  %v1868_v9 = vsel %vm1836_vm4, %v1820_v45, %v1852_v11 }
 0x45a   : > { %2074 = vperm.xlu1 %3162, %v4218_v33   ;;  %v3249_v37 = vpop.eup %3248  ;;  %3256 = vpow2.f32 %v1910_v32  ;;  %v1916_v59 = vmul.f32 1.442695, %v1885_v0  ;;  %v1884_v49 = vsub.f32 0.0, %v1868_v9 }
 0x45b   : > { %v4262_v38 = vmul.f32 %v3249_v37, %v4151_v48  ;;  %3258 = vrcp.f32 %v1929_v57 }
 0x45c   : > { %v1914_v34 = vmul.f32 1.442695, %v1884_v49 }
 0x45d   : > { %2187 = vperm.xlu0 %3170, %v4242_v16  }
 0x45e   : > { %3163 = vset.pattern.permute.xlu1 %v4642_v62 }
 0x45f   : > { %2167 = vperm.xlu1 %3163, %v4218_v33  }
 0x461   : > { %3176 = vset.pattern.permute.xlu0 %v4644_v61  ;;  %v3251_v41 = vpop.eup %3250 }
 0x462   : > { %2094 = vperm.xlu0 %3176, %v4251_v12   ;;  %v3253_v23 = vpop.eup %3252 }
 0x463   : > { %3165 = vset.pattern.permute.xlu1 %v3325_v30  ;;  %v1931_v35 = vadd.f32 1.0, %v3253_v23  ;;  %v3255_v48 = vpop.eup %3254 }
 0x464   : > { %2327 = vperm.xlu1 %3165, %v4218_v33   ;;  %v1928_v33 = vadd.f32 1.0, %v3251_v41  ;;  %v3257_v13 = vpop.eup %3256  ;;  %v2054_v1 = vmul.f32 %v3255_v48, %v4153_v22 }
 0x465   : > { %v3259_v5 = vpop.eup %3258  ;;  %v1930_v14 = vadd.f32 1.0, %v3257_v13 }
 0x466   : > { %3179 = vset.pattern.permute.xlu0 %v3325_v30  ;;  %3260 = vrcp.f32 %v1928_v33  ;;  %v4277_v25 = vmul.f32 %v3259_v5, %v4155_v6 }
 0x467   : > { %2343 = vperm.xlu0 %3179, %v4251_v12   ;;  %3262 = vpow2.f32 %v1916_v59 }
 0x468   : > { %3166 = vset.pattern.permute.xlu1 %v4644_v61  ;;  %3264 = vrcp.f32 %v1931_v35 }
 0x469   : > { %2089 = vperm.xlu1 %3166, %v4227_v15   ;;  %3266 = vpow2.f32 %v1914_v34 }
 0x46a   : > { %3268 = vrcp.f32 %v1930_v14 }
 0x46b   : > { %3180 = vset.pattern.permute.xlu0 %v4644_v61 }
 0x46c   : > { %2109 = vperm.xlu0 %3180, %v4262_v38  }
 0x46d   : > { %3167 = vset.pattern.permute.xlu1 %v4642_v62 }
 0x46e   : > { %2179 = vperm.xlu1 %3167, %v4227_v15  }
 0x470   : > { %3183 = vset.pattern.permute.xlu0 %v3325_v30  ;;  %v3261_v27 = vpop.eup %3260 }
 0x471   : > { %2355 = vperm.xlu0 %3183, %v4262_v38   ;;  %v4283_v22 = vmul.f32 %v3261_v27, %v4157_v8 }
 0x472   : > { %3168 = vset.pattern.permute.xlu1 %v3325_v30 }
 0x473   : > { %2339 = vperm.xlu1 %3168, %v4227_v15   ;;  %v3263_v15 = vpop.eup %3262 }
 0x474   : > { %v3265_v3 = vpop.eup %3264  ;;  %v1933_v28 = vadd.f32 1.0, %v3263_v15 }
 0x475   : > { %3186 = vset.pattern.permute.xlu0 %v4647_v29  ;;  %v3267_v6 = vpop.eup %3266  ;;  %v4289_v31 = vmul.f32 %v3265_v3, %v4159_v7 }
 0x476   : > { %2271 = vperm.xlu0 %3186, %v2054_v1   ;;  %v3269_v24 = vpop.eup %3268  ;;  %3270 = vrcp.f32 %v1933_v28  ;;  %v1932_v8 = vadd.f32 1.0, %v3267_v6 }
 0x477   : > { %3169 = vset.pattern.permute.xlu1 %v4644_v61  ;;  %v4295_v44 = vmul.f32 %v3269_v24, %v4161_v2 }
 0x478   : > { %2084 = vperm.xlu1 %3169, %v4232_v50   ;;  %3272 = vrcp.f32 %v1932_v8 }
 0x47a   : > { %2283 = vperm.xlu0 %3186, %v4277_v25  }
 0x47c   : > { %3171 = vset.pattern.permute.xlu1 %v4647_v29 }
 0x47d   : > { %2255 = vperm.xlu1 %3171, %v4232_v50  }
 0x47e   : > { %3192 = vset.pattern.permute.xlu0 %v4642_v62 }
 0x47f   : > { %2199 = vperm.xlu0 %3192, %v4283_v22  }
 0x480   : > { %v3271_v7 = vpop.eup %3270 }
 0x481   : > { %3172 = vset.pattern.permute.xlu1 %v3325_v30  ;;  %v4306_v2 = vmul.f32 %v3271_v7, %v4163_v56 }
 0x482   : > { %2335 = vperm.xlu1 %3172, %v4232_v50   ;;  %v3273_v50 = vpop.eup %3272 }
 0x483   : > { %2211 = vperm.xlu0 %3192, %v4289_v31   ;;  %v4313_v54 = vmul.f32 %v3273_v50, %v4165_v20 }
 0x486   : > { %3173 = vset.pattern.permute.xlu1 %v4644_v61 }
 0x487   : > { %3198 = vset.pattern.permute.xlu0 %v4644_v61  ;;  %2099 = vperm.xlu1 %3173, %v4242_v16  }
 0x488   : > { %2124 = vperm.xlu0 %3198, %v4295_v44  }
 0x48b   : > { %3174 = vset.pattern.permute.xlu1 %v4647_v29 }
 0x48c   : > { %3201 = vset.pattern.permute.xlu0 %v3325_v30  ;;  %2267 = vperm.xlu1 %3174, %v4242_v16  }
 0x48d   : > { %2367 = vperm.xlu0 %3201, %v4295_v44  }
 0x490   : > { %3175 = vset.pattern.permute.xlu1 %v3325_v30 }
 0x491   : > { %3202 = vset.pattern.permute.xlu0 %v4644_v61  ;;  %2347 = vperm.xlu1 %3175, %v4242_v16  }
 0x492   : > { %2139 = vperm.xlu0 %3202, %v4306_v2  }
 0x495   : > { %3177 = vset.pattern.permute.xlu1 %v4642_v62 }
 0x496   : > { %3207 = vset.pattern.permute.xlu0 %v4647_v29  ;;  %2183 = vperm.xlu1 %3177, %v4251_v12  }
 0x497   : > { %2295 = vperm.xlu0 %3207, %v4313_v54  }
 0x49a   : > { %3178 = vset.pattern.permute.xlu1 %v4647_v29 }
 0x49b   : > { %2263 = vperm.xlu1 %3178, %v4251_v12   ;;  %3209 = vset.pattern.permute.xlu0 %v3325_v30 }
 0x49c   : > { %2379 = vperm.xlu0 %3209, %v4306_v2  }
 0x49f   : > { %3181 = vset.pattern.permute.xlu1 %v4642_v62 }
 0x4a0   : > { %2195 = vperm.xlu1 %3181, %v4262_v38  }
 0x4a4   : > { %3182 = vset.pattern.permute.xlu1 %v4647_v29 }
 0x4a5   : > { %2275 = vperm.xlu1 %3182, %v4262_v38  }
 0x4a9   : > { %3184 = vset.pattern.permute.xlu1 %v4644_v61 }
 0x4aa   : > { %2104 = vperm.xlu1 %3184, %v2054_v1  }
 0x4ae   : > { %3185 = vset.pattern.permute.xlu1 %v4642_v62 }
 0x4af   : > { %2191 = vperm.xlu1 %3185, %v2054_v1  }
 0x4b3   : > { %3187 = vset.pattern.permute.xlu1 %v3325_v30 }
 0x4b4   : > { %2351 = vperm.xlu1 %3187, %v2054_v1  }
 0x4b6   : > { %v2244_v56 = vpop.permute.xlu1 %2243  ;;  %v2070_v20 = vpop.permute.xlu0 %2069 }
 0x4b7   : > { %v2143_v46 = vmul.f32 %v2070_v20, %v3857_v60  ;;  %v2303_v52 = vmul.f32 %v2244_v56, %v3857_v60 }
 0x4b8   : > { %3188 = vset.pattern.permute.xlu1 %v4644_v61 }
 0x4b9   : > { %2119 = vperm.xlu1 %3188, %v4277_v25  }
 0x4bb   : > { %v2324_v16 = vpop.permute.xlu1 %2323  ;;  %v2164_v17 = vpop.permute.xlu0 %2163 }
 0x4bc   : > { %v2223_v51 = vmul.f32 %v2164_v17, %v3857_v60  ;;  %v2383_v21 = vmul.f32 %v2324_v16, %v3857_v60 }
 0x4bd   : > { %3189 = vset.pattern.permute.xlu1 %v4642_v62 }
 0x4be   : > { %2203 = vperm.xlu1 %3189, %v4277_v25   ;;  %v2400_v40 = vsel %vm2398_vm5, %v2143_v46, %v2223_v51 }
 0x4bf   : > { %v2417_v47 = vsel %vm2415_vm6, %v2400_v40, %v2303_v52 }
 0x4c0   : > { %v2065_v42 = vpop.permute.xlu1 %2064  ;;  %v2320_v53 = vpop.permute.xlu0 %2319  ;;  %v2434_v57 = vsel %vm2432_vm7, %v2417_v47, %v2383_v21  ;;  %v4653_v21 = vld [vmem:[#allocation7_spill] sm:$0xff] }
 0x4c1   : > { %v2142_v12 = vmul.f32 %v2065_v42, %v3855_v4  ;;  %v2382_v10 = vmul.f32 %v2320_v53, %v3855_v4 }
 0x4c2   : > { %3190 = vset.pattern.permute.xlu1 %v3325_v30 }
 0x4c3   : > { %2363 = vperm.xlu1 %3190, %v4277_v25  }
 0x4c5   : > { %v2160_v39 = vpop.permute.xlu1 %2159  ;;  %v2080_v60 = vpop.permute.xlu0 %2079 }
 0x4c6   : > { %v2222_v43 = vmul.f32 %v2160_v39, %v3855_v4  ;;  %v2145_v59 = vmul.f32 %v2080_v60, %v3878_v26 }
 0x4c7   : > { %3191 = vset.pattern.permute.xlu1 %v4644_v61 }
 0x4c8   : > { %2114 = vperm.xlu1 %3191, %v4283_v22   ;;  %v2399_v32 = vsel %vm2398_vm5, %v2142_v12, %v2222_v43 }
 0x4ca   : > { %v2240_v19 = vpop.permute.xlu1 %2239  ;;  %v2332_v0 = vpop.permute.xlu0 %2331 }
 0x4cb   : > { %v2302_v63 = vmul.f32 %v2240_v19, %v3855_v4  ;;  %v2385_v14 = vmul.f32 %v2332_v0, %v3878_v26 }
 0x4cc   : > { %3193 = vset.pattern.permute.xlu1 %v4647_v29 }
 0x4cd   : > { %v2416_v45 = vsel %vm2415_vm6, %v2399_v32, %v2302_v63  ;;  %2279 = vperm.xlu1 %3193, %v4283_v22   ;;  %v4654_v32 = vld [vmem:[#allocation6_spill] sm:$0xff] }
 0x4ce   : > { %v2433_v37 = vsel %vm2432_vm7, %v2416_v45, %v2382_v10 }
 0x4cf   : > { %v2172_v58 = vpop.permute.xlu1 %2171  ;;  %v2953_v11 = vpack.c.bf16 %v2434_v57, %v2433_v37  ;;  %v2248_v49 = vpop.permute.xlu0 %2247 }
 0x4d0   : > { %v2225_v38 = vmul.f32 %v2172_v58, %v3878_v26  ;;  %v2304_v34 = vmul.f32 %v2248_v49, %v3876_v55 }
 0x4d1   : > { %3194 = vset.pattern.permute.xlu1 %v3325_v30  ;;  %2954 = vmatprep.subr.bf16.mxu1 %v2953_v11 }
 0x4d2   : > { %2359 = vperm.xlu1 %3194, %v4283_v22   ;;  %2956 = vmatpush3.bf16.msra.mxu1 %v2953_v11  ;;  %v2402_v48 = vsel %vm2398_vm5, %v2145_v59, %v2225_v38 }
 0x4d3   : > { %v2260_v6 = vpop.permute.xlu0 %2259 }
 0x4d4   : > { %v2252_v4 = vpop.permute.xlu1 %2251  ;;  %v2307_v20 = vmul.f32 %v2260_v6, %v3889_v36 }
 0x4d5   : > { %v2305_v9 = vmul.f32 %v2252_v4, %v3878_v26 }
 0x4d6   : > { %3195 = vset.pattern.permute.xlu1 %v4644_v61 }
 0x4d7   : > { %2129 = vperm.xlu1 %3195, %v4289_v31   ;;  %v2419_v1 = vsel %vm2415_vm6, %v2402_v48, %v2305_v9 }
 0x4d8   : > { %v2436_v22 = vsel %vm2432_vm7, %v2419_v1, %v2385_v14  ;;  %v4655_v14 = vld [vmem:[#allocation9_spill] sm:$0xff] }
 0x4d9   : > { %v2075_v41 = vpop.permute.xlu1 %2074 }
 0x4da   : > { %v2144_v35 = vmul.f32 %v2075_v41, %v3876_v55 }
 0x4db   : > { %3196 = vset.pattern.permute.xlu1 %v4647_v29 }
 0x4dc   : > { %2291 = vperm.xlu1 %3196, %v4289_v31  }
 0x4de   : > { %v2168_v33 = vpop.permute.xlu1 %2167 }
 0x4df   : > { %v2224_v23 = vmul.f32 %v2168_v33, %v3876_v55 }
 0x4e0   : > { %3197 = vset.pattern.permute.xlu1 %v3325_v30 }
 0x4e1   : > { %2371 = vperm.xlu1 %3197, %v4289_v31   ;;  %v2401_v13 = vsel %vm2398_vm5, %v2144_v35, %v2224_v23 }
 0x4e2   : > { %v2418_v27 = vsel %vm2415_vm6, %v2401_v13, %v2304_v34 }
 0x4e3   : > { %v2328_v5 = vpop.permute.xlu1 %2327 }
 0x4e4   : > { %v2384_v25 = vmul.f32 %v2328_v5, %v3876_v55 }
 0x4e5   : > { %3199 = vset.pattern.permute.xlu1 %v4642_v62 }
 0x4e6   : > { %2207 = vperm.xlu1 %3199, %v4295_v44   ;;  %v2435_v15 = vsel %vm2432_vm7, %v2418_v27, %v2384_v25 }
 0x4e7   : > { %v2957_v3 = vpack.c.bf16 %v2436_v22, %v2435_v15  ;;  %v4656_v22 = vld [vmem:[#allocation8_spill] sm:$0xff] }
 0x4e8   : > { %v2090_v28 = vpop.permute.xlu1 %2089 }
 0x4e9   : > { %2958 = vmatprep.subr.bf16.mxu1 %v2957_v3  ;;  %v2147_v7 = vmul.f32 %v2090_v28, %v3889_v36 }
 0x4ea   : > { %3200 = vset.pattern.permute.xlu1 %v4647_v29  ;;  %2960 = vmatpush3.bf16.msra.mxu1 %v2957_v3 }
 0x4eb   : > { %2287 = vperm.xlu1 %3200, %v4295_v44   ;;  %v2176_v44 = vpop.permute.xlu0 %2175 }
 0x4ed   : > { %v2180_v26 = vpop.permute.xlu1 %2179 }
 0x4ee   : > { %v2227_v24 = vmul.f32 %v2180_v26, %v3889_v36 }
 0x4ef   : > { %3203 = vset.pattern.permute.xlu1 %v4642_v62  ;;  %v2188_v12 = vpop.permute.xlu0 %2187 }
 0x4f0   : > { %2219 = vperm.xlu1 %3203, %v4306_v2   ;;  %v2229_v58 = vmul.f32 %v2188_v12, %v4653_v21 }
 0x4f2   : > { %v2340_v55 = vpop.permute.xlu1 %2339 }
 0x4f3   : > { %v2387_v56 = vmul.f32 %v2340_v55, %v3889_v36  ;;  %v4652_v36 = vlaneseq  ;;  %v2095_v63 = vpop.permute.xlu0 %2094 }
 0x4f4   : > { %3204 = vset.pattern.permute.xlu1 %v4647_v29  ;;  %v2148_v11 = vmul.f32 %v2095_v63, %v4654_v32 }
 0x4f5   : > { %2299 = vperm.xlu1 %3204, %v4306_v2   ;;  %v2226_v2 = vmul.f32 %v2176_v44, %v3887_v18  ;;  %v2451_v52 = vshrl.u32 %v4652_v36, 7  ;;  %v4658_v36 = vld [vmem:[#allocation11_spill] sm:$0xff] }
 0x4f7   : > { %v2085_v31 = vpop.permute.xlu1 %2084  ;;  %v2344_v37 = vpop.permute.xlu0 %2343 }
 0x4f8   : > { %v2146_v50 = vmul.f32 %v2085_v31, %v3887_v18  ;;  %v2388_v0 = vmul.f32 %v2344_v37, %v4654_v32 }
 0x4f9   : > { %3205 = vset.pattern.permute.xlu1 %v4644_v61  ;;  %v2404_v61 = vsel %vm2398_vm5, %v2147_v7, %v2227_v24 }
 0x4fa   : > { %2134 = vperm.xlu1 %3205, %v4313_v54   ;;  %v2403_v42 = vsel %vm2398_vm5, %v2146_v50, %v2226_v2  ;;  %v2421_v51 = vsel %vm2415_vm6, %v2404_v61, %v2307_v20 }
 0x4fb   : > { %v2438_v46 = vsel %vm2432_vm7, %v2421_v51, %v2387_v56  ;;  %v2110_v13 = vpop.permute.xlu0 %2109  ;;  %v4657_v51 = vld [vmem:[#allocation10_spill] sm:$0xff] }
 0x4fc   : > { %v2256_v8 = vpop.permute.xlu1 %2255  ;;  %v2151_v28 = vmul.f32 %v2110_v13, %v4655_v14 }
 0x4fd   : > { %v2306_v29 = vmul.f32 %v2256_v8, %v3887_v18 }
 0x4fe   : > { %3206 = vset.pattern.permute.xlu1 %v4642_v62 }
 0x4ff   : > { %2215 = vperm.xlu1 %3206, %v4313_v54   ;;  %v2420_v62 = vsel %vm2415_vm6, %v2403_v42, %v2306_v29  ;;  %v2356_v5 = vpop.permute.xlu0 %2355 }
 0x500   : > { %v2391_v7 = vmul.f32 %v2356_v5, %v4655_v14 }
 0x501   : > { %v2336_v16 = vpop.permute.xlu1 %2335 }
 0x502   : > { %v2386_v17 = vmul.f32 %v2336_v16, %v3887_v18  ;;  %v4409_v18 = vld [vmem:[%s366_s13] ss:$0 sm:$0xff] }
 0x503   : > { %3208 = vset.pattern.permute.xlu1 %v3325_v30  ;;  %v4411_v30 = vadd.s32 8, %v2451_v52  ;;  %vm2457_vm8 = vcmp.eq.s32.totalorder %v2451_v52, %v4409_v18  ;;  %v2272_v26 = vpop.permute.xlu0 %2271 }
 0x504   : > { %2375 = vperm.xlu1 %3208, %v4313_v54   ;;  %v2437_v39 = vsel %vm2432_vm7, %v2420_v62, %v2386_v17  ;;  %v3326_v54 = vmov 1.0   ;;  %v2310_v24 = vmul.f32 %v2272_v26, %v4656_v22 }
 0x505   : > { %v2961_v40 = vpack.c.bf16 %v2438_v46, %v2437_v39  ;;  %vm2458_vm9 = vcmp.eq.s32.totalorder %v4411_v30, %v4409_v18  ;;  %2938 = vmatprep.mubr.msk.f32.mxu1 %vm2457_vm8, %v3326_v54 }
 0x506   : > { %v2100_v43 = vpop.permute.xlu1 %2099 }
 0x507   : > { %2962 = vmatprep.subr.bf16.mxu1 %v2961_v40  ;;  %v2149_v10 = vmul.f32 %v2100_v43, %v4653_v21  ;;  %v2284_v17 = vpop.permute.xlu0 %2283 }
 0x508   : > { %2964 = vmatpush3.bf16.msra.mxu1 %v2961_v40 }
 0x509   : > { %v2406_v38 = vsel %vm2398_vm5, %v2149_v10, %v2229_v58 }
 0x50b   : > { %v2268_v53 = vpop.permute.xlu1 %2267  ;;  %v2200_v40 = vpop.permute.xlu0 %2199 }
 0x50c   : > { %v2309_v57 = vmul.f32 %v2268_v53, %v4653_v21  ;;  %v2232_v12 = vmul.f32 %v2200_v40, %v4658_v36 }
 0x50e   : > { %v2423_v9 = vsel %vm2415_vm6, %v2406_v38, %v2309_v57 }
 0x510   : > { %v2348_v19 = vpop.permute.xlu1 %2347 }
 0x511   : > { %v2389_v60 = vmul.f32 %v2348_v19, %v4653_v21 }
 0x513   : > { %v2440_v49 = vsel %vm2432_vm7, %v2423_v9, %v2389_v60  ;;  %v4659_v9 = vld [vmem:[#allocation12_spill] sm:$0xff] }
 0x515   : > { %v2184_v47 = vpop.permute.xlu1 %2183 }
 0x516   : > { %v2228_v45 = vmul.f32 %v2184_v47, %v4654_v32  ;;  %v2313_v47 = vmul.f32 %v2284_v17, %v4657_v51 }
 0x518   : > { %v2405_v33 = vsel %vm2398_vm5, %v2148_v11, %v2228_v45 }
 0x51a   : > { %v2264_v4 = vpop.permute.xlu1 %2263 }
 0x51b   : > { %v2308_v41 = vmul.f32 %v2264_v4, %v4654_v32 }
 0x51d   : > { %v2422_v23 = vsel %vm2415_vm6, %v2405_v33, %v2308_v41  ;;  %v2212_v41 = vpop.permute.xlu0 %2211 }
 0x51e   : > { %v2439_v59 = vsel %vm2432_vm7, %v2422_v23, %v2388_v0  ;;  %v2235_v13 = vmul.f32 %v2212_v41, %v4659_v9 }
 0x51f   : > { %v2196_v35 = vpop.permute.xlu1 %2195  ;;  %v2965_v48 = vpack.c.bf16 %v2440_v49, %v2439_v59  ;;  %v4660_v59 = vld [vmem:[#allocation13_spill] sm:$0xff] }
 0x520   : > { %v2231_v25 = vmul.f32 %v2196_v35, %v4655_v14 }
 0x521   : > { %2966 = vmatprep.subr.bf16.mxu1 %v2965_v48  ;;  %v2125_v38 = vpop.permute.xlu0 %2124 }
 0x522   : > { %2968 = vmatpush3.bf16.msra.mxu1 %v2965_v48  ;;  %v2408_v6 = vsel %vm2398_vm5, %v2151_v28, %v2231_v25 }
 0x524   : > { %v2276_v34 = vpop.permute.xlu1 %2275 }
 0x525   : > { %v2311_v15 = vmul.f32 %v2276_v34, %v4655_v14  ;;  %v2368_v35 = vpop.permute.xlu0 %2367  ;;  %v2154_v34 = vmul.f32 %v2125_v38, %v4660_v59 }
 0x526   : > { %v2394_v25 = vmul.f32 %v2368_v35, %v4660_v59 }
 0x527   : > { %v2425_v8 = vsel %vm2415_vm6, %v2408_v6, %v2311_v15 }
 0x528   : > { %v2442_v61 = vsel %vm2432_vm7, %v2425_v8, %v2391_v7  ;;  %v4661_v7 = vld [vmem:[#allocation14_spill] sm:$0xff] }
 0x529   : > { %v2105_v1 = vpop.permute.xlu1 %2104 }
 0x52a   : > { %v2150_v55 = vmul.f32 %v2105_v1, %v4656_v22 }
 0x52e   : > { %v2192_v27 = vpop.permute.xlu1 %2191 }
 0x52f   : > { %v2230_v3 = vmul.f32 %v2192_v27, %v4656_v22 }
 0x531   : > { %v2407_v31 = vsel %vm2398_vm5, %v2150_v55, %v2230_v3 }
 0x532   : > { %v2424_v29 = vsel %vm2415_vm6, %v2407_v31, %v2310_v24  ;;  %v2140_v24 = vpop.permute.xlu0 %2139 }
 0x533   : > { %v2352_v44 = vpop.permute.xlu1 %2351 }
 0x534   : > { %v2390_v50 = vmul.f32 %v2352_v44, %v4656_v22 }
 0x536   : > { %v2441_v2 = vsel %vm2432_vm7, %v2424_v29, %v2390_v50  ;;  %v2296_v44 = vpop.permute.xlu0 %2295 }
 0x537   : > { %v2969_v56 = vpack.c.bf16 %v2442_v61, %v2441_v2  ;;  %v4662_v61 = vld [vmem:[#allocation15_spill] sm:$0xff] }
 0x538   : > { %v2120_v20 = vpop.permute.xlu1 %2119 }
 0x539   : > { %2970 = vmatprep.subr.bf16.mxu1 %v2969_v56  ;;  %v2153_v43 = vmul.f32 %v2120_v20, %v4657_v51  ;;  %v2157_v20 = vmul.f32 %v2140_v24, %v4661_v7 }
 0x53a   : > { %2972 = vmatpush3.bf16.msra.mxu1 %v2969_v56 }
 0x53d   : > { %v2204_v16 = vpop.permute.xlu1 %2203 }
 0x53e   : > { %v2233_v39 = vmul.f32 %v2204_v16, %v4657_v51 }
 0x540   : > { %v2410_v19 = vsel %vm2398_vm5, %v2153_v43, %v2233_v39 }
 0x541   : > { %v2427_v37 = vsel %vm2415_vm6, %v2410_v19, %v2313_v47  ;;  %v2464_v19 = vld [vmem:[#allocation2 + $0x8] sm:$0xff] }
 0x542   : > { %v2364_v42 = vpop.permute.xlu1 %2363 }
 0x543   : > { %v2393_v63 = vmul.f32 %v2364_v42, %v4657_v51  ;;  %v2380_v42 = vpop.permute.xlu0 %2379  ;;  %v2316_v51 = vmul.f32 %v2296_v44, %v4662_v61 }
 0x544   : > { %v2397_v40 = vmul.f32 %v2380_v42, %v4661_v7 }
 0x545   : > { %v2444_v58 = vsel %vm2432_vm7, %v2427_v37, %v2393_v63  ;;  %v2463_v63 = vld [vmem:[#allocation2] sm:$0xff] }
 0x547   : > { %v2115_v62 = vpop.permute.xlu1 %2114 }
 0x548   : > { %v2152_v52 = vmul.f32 %v2115_v62, %v4658_v36 }
 0x54a   : > { %v2409_v10 = vsel %vm2398_vm5, %v2152_v52, %v2232_v12 }
 0x54c   : > { %v2280_v46 = vpop.permute.xlu1 %2279 }
 0x54d   : > { %v2312_v53 = vmul.f32 %v2280_v46, %v4658_v36 }
 0x54f   : > { %v2426_v45 = vsel %vm2415_vm6, %v2409_v10, %v2312_v53 }
 0x551   : > { %v2360_v21 = vpop.permute.xlu1 %2359 }
 0x552   : > { %v2392_v32 = vmul.f32 %v2360_v21, %v4658_v36 }
 0x554   : > { %v2443_v57 = vsel %vm2432_vm7, %v2426_v45, %v2392_v32 }
 0x555   : > { %v2973_v11 = vpack.c.bf16 %v2444_v58, %v2443_v57 }
 0x556   : > { %v2130_v60 = vpop.permute.xlu1 %2129 }
 0x557   : > { %2974 = vmatprep.subr.bf16.mxu1 %v2973_v11  ;;  %v2155_v23 = vmul.f32 %v2130_v60, %v4659_v9 }
 0x558   : > { %2976 = vmatpush3.bf16.msra.mxu1 %v2973_v11 }
 0x559   : > { %v2412_v27 = vsel %vm2398_vm5, %v2155_v23, %v2235_v13 }
 0x55b   : > { %v2292_v4 = vpop.permute.xlu1 %2291 }
 0x55c   : > { %v2315_v48 = vmul.f32 %v2292_v4, %v4659_v9 }
 0x55e   : > { %v2429_v22 = vsel %vm2415_vm6, %v2412_v27, %v2315_v48 }
 0x560   : > { %v2372_v0 = vpop.permute.xlu1 %2371 }
 0x561   : > { %v2395_v1 = vmul.f32 %v2372_v0, %v4659_v9 }
 0x563   : > { %v2446_v26 = vsel %vm2432_vm7, %v2429_v22, %v2395_v1 }
 0x565   : > { %v2208_v33 = vpop.permute.xlu1 %2207 }
 0x566   : > { %v2234_v49 = vmul.f32 %v2208_v33, %v4660_v59 }
 0x568   : > { %v2411_v15 = vsel %vm2398_vm5, %v2154_v34, %v2234_v49 }
 0x56a   : > { %v2288_v5 = vpop.permute.xlu1 %2287 }
 0x56b   : > { %v2314_v14 = vmul.f32 %v2288_v5, %v4660_v59 }
 0x56d   : > { %v2428_v3 = vsel %vm2415_vm6, %v2411_v15, %v2314_v14 }
 0x56e   : > { %v2445_v28 = vsel %vm2432_vm7, %v2428_v3, %v2394_v25 }
 0x56f   : > { %v2220_v55 = vpop.permute.xlu1 %2219  ;;  %v2977_v6 = vpack.c.bf16 %v2446_v26, %v2445_v28 }
 0x570   : > { %v2237_v50 = vmul.f32 %v2220_v55, %v4661_v7 }
 0x571   : > { %2978 = vmatprep.subr.bf16.mxu1 %v2977_v6 }
 0x572   : > { %2980 = vmatpush3.bf16.msra.mxu1 %v2977_v6  ;;  %v2414_v17 = vsel %vm2398_vm5, %v2157_v20, %v2237_v50 }
 0x574   : > { %v2300_v31 = vpop.permute.xlu1 %2299 }
 0x575   : > { %v2317_v2 = vmul.f32 %v2300_v31, %v4661_v7 }
 0x577   : > { %v2431_v39 = vsel %vm2415_vm6, %v2414_v17, %v2317_v2 }
 0x578   : > { %v2448_v53 = vsel %vm2432_vm7, %v2431_v39, %v2397_v40 }
 0x579   : > { %v2135_v8 = vpop.permute.xlu1 %2134 }
 0x57a   : > { %v2156_v16 = vmul.f32 %v2135_v8, %v4662_v61 }
 0x57e   : > { %v2216_v29 = vpop.permute.xlu1 %2215 }
 0x57f   : > { %v2236_v56 = vmul.f32 %v2216_v29, %v4662_v61 }
 0x581   : > { %v2413_v62 = vsel %vm2398_vm5, %v2156_v16, %v2236_v56 }
 0x582   : > { %v2430_v36 = vsel %vm2415_vm6, %v2413_v62, %v2316_v51 }
 0x583   : > { %v2376_v46 = vpop.permute.xlu1 %2375 }
 0x584   : > { %v2396_v43 = vmul.f32 %v2376_v46, %v4662_v61 }
 0x586   : > { %v2447_v52 = vsel %vm2432_vm7, %v2430_v36, %v2396_v43 }
 0x587   : > { %v2981_v12 = vpack.c.bf16 %v2448_v53, %v2447_v52 }
 0x589   : > { %2982 = vmatprep.subr.bf16.mxu1 %v2981_v12 }
 0x58a   : > { %2984 = vmatpush3.bf16.msra.mxu1 %v2981_v12 }
 0x58d   : > { %2939 = vmatmul.mubr.msk.f32.vlgmr.msra.gmra.mrb[22].mxu1 %vm2458_vm9, %v3326_v54 }
 0x65e   : > { %2547 = sbr.rel (%p2743_p6) target bundleno = 1665 (0x681), region = 64 }
 0x660   : > { %v2940_v47 = vpop.f32.mrb[22].mxu1 }
 0x661   : > { %v2541_v21 = vadd.f32 %v2940_v47, %v2464_v19  ;;  %v2531_v10 = vpop.f32.mrb[23].mxu1 }
 0x662   : > { %v2540_v32 = vadd.f32 %v2531_v10, %v2463_v63 }
 0x663   : > { %2543 = vst.msk [vmem:[#allocation2 + $0x8] sm:$0xff] %vm502_vm1, %v2541_v21 }
 0x664   : > { %2542 = vst.msk [vmem:[#allocation2] sm:$0xff] %vm502_vm1, %v2540_v32 }
 0x66a   : > { %v2549_v37 = vld [vmem:[#allocation2 + $0x8] sm:$0xff] }
 0x66b   : > { %v2548_v45 = vld [vmem:[#allocation2] sm:$0xff]  ;;  %v2553_v58 = vmin.f32 %v2549_v37, 0.0  ;;  %vm2551_vm11 = vcmp.gt.f32.partialorder %v2549_v37, 0.0 }
 0x66c   : > { %v2552_v57 = vmin.f32 %v2548_v45, 0.0  ;;  %vm2550_vm10 = vcmp.gt.f32.partialorder %v2548_v45, 0.0 }
 0x66d   : > { %v2556_v18 = vmul.f32 1.442695, %v2553_v58 }
 0x66e   : > { %v2554_v11 = vmul.f32 1.442695, %v2552_v57 }
 0x670   : > { %3274 = vpow2.f32 %v2554_v11 }
 0x671   : > { %3276 = vpow2.f32 %v2556_v18 }
 0x67a   : > { %v3275_v30 = vpop.eup %3274 }
 0x67b   : > { %v3277_v54 = vpop.eup %3276  ;;  %v2744_v60 = vadd.f32 -1.0, %v3275_v30 }
 0x67c   : > { %v2745_v4 = vadd.f32 -1.0, %v3277_v54 }
 0x67d   : > { %v2560_v41 = vsel %vm2550_vm10, %v2548_v45, %v2744_v60 }
 0x67e   : > { %v2562_v0 = vsel %vm502_vm1, %v2560_v41, 0.0  ;;  %v2561_v38 = vsel %vm2551_vm11, %v2549_v37, %v2745_v4 }
 0x67f   : > { %2564 = vst [vmem:[#allocation3] sm:$0xff] %v2562_v0  ;;  %v2563_v33 = vsel %vm502_vm1, %v2561_v38, 0.0 }
 0x680   : > { %2565 = vst [vmem:[#allocation3 + $0x8] sm:$0xff] %v2563_v33 }
 0x681 PF: > { %p2991_p7 = scmp.eq.s32.totalorder %s3386_s10, 2  ;;  %s3327_s8 = smov [#allocation3]  }
 0x682   : > { %s2572_s13 = sshll.u32 %s3327_s8, 4  ;;  %s2573_s13 = int_to_ptr.vmem [resolvable:$true] %s2572_s13 }
 0x683   : > { %s3278_s23 = scalar_lea.vmem %s2573_s13, 256  ;;  %p3285_p11 = scmp.lt.s32.totalorder %s2573_s13, %s2573_s13 }
 0x684   : > { %p3279_p8 = scmp.ne.s32.totalorder %s2573_s13, %s3278_s23  ;;  %p3286_p12 = scmp.lt.s32.totalorder %s3278_s23, %s3278_s23 }
 0x686   : > { %p3280_p9 = pnand %p3279_p8, %p2991_p7  ;;  %p3287_p13 = por %p3286_p12, %p3285_p11 }
 0x688   : > { %p3281_p10 = pneg %p3280_p9 }
 0x68a   : > { %p3288_p0 = pnand %p3287_p13, %p3281_p10 }
 0x68c   : > { %3291 = shalt.err (!%p3288_p0)
}
 0x68d   : > { %s3292_s26 = scalar_lea.hbm %s4531_s9, 256 }
 0x68e   : > { %p3293_p1 = scmp.ne.s32.totalorder %s4531_s9, %s3292_s26  ;;  %p3298_p4 = scmp.lt.u32.totalorder %s3292_s26, %s4531_s9 }
 0x690   : > { %p3294_p2 = pnand %p3293_p1, %p2991_p7 }
 0x692   : > { %p3295_p3 = pneg %p3294_p2 }
 0x694   : > { %p3300_p5 = pnand %p3298_p4, %p3295_p3 }
 0x696   : > { %3303 = shalt.err (!%p3300_p5)
}
 0x697   : > { %s3328_s11 = smov 128   ;;  %s3329_s12 = smov 8  }
 0x698   : > { %2988 = dma.vmem_to_hbm [thread:$0]  (%p2991_p7), %s2573_s13, 256, %s4531_s9, [#allocation4], %s3328_s11, %s3328_s11, %s3329_s12  }
 0x699   : > { %3309 = dma.done.wait (%p2991_p7), [#allocation4], 256  }
 0x69a   : > { %3311 = vsyncadd (%p2991_p7), [#allocation4], 4294967040 }
 0x69b PF: > { %s20_s30 = sadd.s32 1, %s3314_s30  }
 0x69c   : > { %p17_p6 = scmp.ge.s32.totalorder %s20_s30, 5  }
 0x69e   :  { %19 = sbr.rel (!%p17_p6) target bundleno = 1 (0x1), region = 100 }
 0x6a5   :  { %2588 = vsyncpa [#allocation4], 1 }
 0x6a6   :  { %2590 = vsyncpa [#allocation4 + $0x1], 1 }

</bundles_post_ra>
